<compile_context>
chip_gen: v5e
topology: v5e:2x2
jax: 0.10.0
libtpu: 0.0.40
codegen_flags: <defaults>
</compile_context>

<pallas_src>
import math

import jax
import jax.numpy as jnp
import numpy as np
from jax.experimental import pallas as pl
from jax.experimental.pallas import tpu as pltpu


def _pos_embed_kernel(pos_ref, freq_ref, o_ref):
    # pos_ref : (1, TP)  float32   joint index per flattened (frame, joint) pos
    # freq_ref: (TC, 1)  float32   div_term[c // 2] for each channel in the tile
    # o_ref   : (TC, TP) float32
    tc = o_ref.shape[0]
    c_base = pl.program_id(0) * tc

    # (1, TP) * (TC, 1) -> (TC, TP): sublane + lane broadcast on the VPU.
    arg = pos_ref[...] * freq_ref[...]

    # Even channels -> sin, odd channels -> cos.
    c_idx = c_base + jax.lax.broadcasted_iota(jnp.int32, arg.shape, 0)
    is_sin = (c_idx & 1) == 0
    o_ref[...] = jnp.where(is_sin, jnp.sin(arg), jnp.cos(arg)).astype(o_ref.dtype)


def _pick_tile(dim, candidates):
    """Largest candidate that evenly divides dim, else the full dim."""
    for c in candidates:
        if dim >= c and dim % c == 0:
            return c
    return dim


def pos_embed_forward(channels, num_frames, num_joints, dtype=jnp.float32):
    """Returns pe of shape (1, channels, num_frames, num_joints)."""
    C, T, V = channels, num_frames, num_joints
    P = T * V

    # Tiny precomputed index / frequency vectors (same role as the torch
    # `position` and `div_term` buffers).
    pos = jnp.tile(jnp.arange(V, dtype=jnp.float32), T).reshape(1, P)
    k = (jnp.arange(C, dtype=jnp.int32) // 2).astype(jnp.float32)
    freq = jnp.exp(k * (-(2.0 * math.log(10000.0)) / C)).reshape(C, 1)

    # Lane-dense tiling: positions on lanes (multiple of 128), channels on
    # sublanes (multiple of 8).  Fall back to the full dim if it doesn't divide.
    tp = _pick_tile(P, (2048, 1024, 512, 256, 128))
    tc = _pick_tile(C, (256, 128, 64, 32, 16, 8))

    pe2d = pl.pallas_call(
        _pos_embed_kernel,
        out_shape=jax.ShapeDtypeStruct((C, P), dtype),
        grid=(C // tc, P // tp),
        in_specs=[
            pl.BlockSpec((1, tp), lambda i, j: (0, j)),   # position tile
            pl.BlockSpec((tc, 1), lambda i, j: (i, 0)),   # per-channel freq tile
        ],
        out_specs=pl.BlockSpec((tc, tp), lambda i, j: (i, j)),
        compiler_params=pltpu.CompilerParams(
            dimension_semantics=("parallel", "parallel"),
        ),
    )(pos, freq)

    # (C, T*V) -> (1, C, T, V): pure view, no data movement.
    return pe2d.reshape(1, C, T, V)


def _pos_embed_reference(channels, num_frames, num_joints):
    """NumPy port of the PyTorch __init__ buffer construction."""
    C, T, V = channels, num_frames, num_joints
    pos_list = [st for _tk in range(T) for st in range(V)]
    position = np.array(pos_list, dtype=np.float32)[:, None]            # (T*V, 1)
    div_term = np.exp(np.arange(0, C, 2, dtype=np.float32)
                      * -(math.log(10000.0) / C))                       # (C/2,)
    pe = np.zeros((T * V, C), dtype=np.float32)
    pe[:, 0::2] = np.sin(position * div_term)
    pe[:, 1::2] = np.cos(position * div_term)
    return pe.reshape(T, V, C).transpose(2, 0, 1)[None, ...]            # (1,C,T,V)


if __name__ == "__main__":
    # Small shapes consistent with the module: channels, num_frames, num_joints.
    C, T, V = 64, 16, 8

    # Pos_Embed.forward() takes no tensor inputs (it returns a constant buffer);
    # the PRNG key is created only to follow the harness convention.
    _ = jax.random.PRNGKey(0)

    pe = pos_embed_forward(C, T, V)
    pe = jax.block_until_ready(pe)

    ref = _pos_embed_reference(C, T, V)
    assert pe.shape == (1, C, T, V), f"unexpected shape {pe.shape}"
    assert np.allclose(np.asarray(pe), ref, atol=1e-5, rtol=1e-5), \
        "mismatch vs reference"

    print("KERNEL_OK")
</pallas_src>

<mosaic_0001>
module attributes {stable_mosaic.version = 11 : i64} {
  func.func @_pos_embed_kernel(%arg0: i32, %arg1: i32, %arg2: memref<1x128xf32, #tpu.memory_space<vmem>>, %arg3: memref<64x1xf32, #tpu.memory_space<vmem>>, %arg4: memref<64x128xf32, #tpu.memory_space<vmem>>) attributes {dimension_semantics = [#tpu.dimension_semantics<parallel>, #tpu.dimension_semantics<parallel>], iteration_bounds = array<i64: 1, 1>, scalar_prefetch = 0 : i64, scratch_operands = 0 : i64, tpu.core_type = #tpu.core_type<tc>, window_params = [{transform_indices = @transform_0, window_bounds = array<i64: 1, 128>}, {transform_indices = @transform_1, window_bounds = array<i64: 64, 1>}, {transform_indices = @transform_2, window_bounds = array<i64: 64, 128>}]} {
    %c64_i32 = arith.constant 64 : i32
    %0 = arith.muli %arg0, %c64_i32 : i32
    %c0 = arith.constant 0 : index
    %c0_0 = arith.constant 0 : index
    %1 = vector.load %arg2[%c0, %c0_0] : memref<1x128xf32, #tpu.memory_space<vmem>>, vector<1x128xf32>
    %c0_1 = arith.constant 0 : index
    %c0_2 = arith.constant 0 : index
    %2 = vector.load %arg3[%c0_1, %c0_2] : memref<64x1xf32, #tpu.memory_space<vmem>>, vector<64x1xf32>
    %3 = vector.broadcast %1 : vector<1x128xf32> to vector<64x128xf32>
    %4 = vector.broadcast %2 : vector<64x1xf32> to vector<64x128xf32>
    %5 = arith.mulf %3, %4 : vector<64x128xf32>
    %6 = tpu.iota {dimensions = array<i32: 0>} : vector<64x128xi32>
    %7 = vector.broadcast %0 : i32 to vector<64x128xi32>
    %8 = arith.addi %7, %6 : vector<64x128xi32>
    %c1_i32 = arith.constant 1 : i32
    %9 = vector.broadcast %c1_i32 : i32 to vector<64x128xi32>
    %10 = arith.andi %8, %9 : vector<64x128xi32>
    %c0_i32 = arith.constant 0 : i32
    %11 = vector.broadcast %c0_i32 : i32 to vector<64x128xi32>
    %12 = arith.cmpi eq, %10, %11 : vector<64x128xi32>
    %13 = math.sin %5 : vector<64x128xf32>
    %14 = math.cos %5 : vector<64x128xf32>
    %15 = arith.select %12, %13, %14 : vector<64x128xi1>, vector<64x128xf32>
    %c0_3 = arith.constant 0 : index
    %c0_4 = arith.constant 0 : index
    %16 = vector.load %arg4[%c0_3, %c0_4] : memref<64x128xf32, #tpu.memory_space<vmem>>, vector<64x128xf32>
    tpu.vector_store %arg4[%c0_3, %c0_4], %15 {strides = array<i32>} : memref<64x128xf32, #tpu.memory_space<vmem>>, vector<64x128xf32>,
    return
  }
  func.func @transform_0(%arg0: i32, %arg1: i32) -> (i32, i32) {
    %c0_i32 = arith.constant 0 : i32
    %c0_i32_0 = arith.constant 0 : i32
    return %c0_i32, %arg1 : i32, i32
  }
  func.func @transform_1(%arg0: i32, %arg1: i32) -> (i32, i32) {
    %c0_i32 = arith.constant 0 : i32
    %c0_i32_0 = arith.constant 0 : i32
    return %arg0, %c0_i32 : i32, i32
  }
  func.func @transform_2(%arg0: i32, %arg1: i32) -> (i32, i32) {
    %c0_i32 = arith.constant 0 : i32
    return %arg0, %arg1 : i32, i32
  }
}

</mosaic_0001>

<bundles_post_ra>
// kernel: tpu_custom_call.1
= control target key start
LH: loop header
LB: loop body
LE: loop exit
PB: predicated region body
PF: predicated region fallthrough
CT: control target
= control target key end

     0   :  { %v4084_v3 = vmov 0   ;;  %s4064_s0 = inlined_call_operand.vmem [shape: f32[1,128], index: 0, kind: input, shape index: {}]   ;;  %s4065_s1 = inlined_call_operand.vmem [shape: f32[64,1], index: 1, kind: input, shape index: {}]   ;;  %s4066_s2 = inlined_call_operand.hbm [shape: f32[64,128], index: 2, kind: output, shape index: {}]  }
   0x1   :  { %v18_v0 = vld [vmem:[%s4065_s1 + $0x20] sm:$0xff]  ;;  %v16_v1 = vld [vmem:[%s4065_s1 + $0x10] sm:$0xff]  ;;  %2673 = vset.pattern.permute.xlu2 %v4084_v3  ;;  %2672 = vset.pattern.permute.xlu1 %v4084_v3 }
   0x2   :  { %v14_v2 = vld [vmem:[%s4065_s1] sm:$0xff]  ;;  %2671 = vset.pattern.permute.xlu0 %v4084_v3  ;;  %47 = vperm.xlu2 %2673, %v18_v0  }
   0x3   :  { %7 = vsyncpa [#allocation3], 0  ;;  %37 = vperm.xlu1 %2672, %v16_v1   ;;  %27 = vperm.xlu0 %2671, %v14_v2   ;;  %v19_v4 = vld [vmem:[%s4065_s1 + $0x28] sm:$0xff]  ;;  %v17_v5 = vld [vmem:[%s4065_s1 + $0x18] sm:$0xff]  ;;  %v4080_v33 = vmov 683565275  }
   0x4   :  { %v15_v6 = vld [vmem:[%s4065_s1 + $0x8] sm:$0xff]  ;;  %v21_v7 = vld [vmem:[%s4065_s1 + $0x38] sm:$0xff]  ;;  %v20_v8 = vld [vmem:[%s4065_s1 + $0x30] sm:$0xff]  ;;  %v4078_v35 = vmov 2475754826   ;;  %s2601_s3 = sshll.u32 %s4066_s2, 4  ;;  %s2602_s3 = int_to_ptr.hbm [resolvable:$true] %s2601_s3 }
   0x5   :  { %v2757_v9 = vld [vmem:[%s4064_s0] ss:$0 sm:$0xff]  ;;  %v4076_v39 = vmov 2131351028   ;;  %v4074_v41 = vmov 2102212464  }
   0x6   :  { %v4072_v43 = vmov 920167782   ;;  %v4070_v48 = vmov 1326507024   ;;  %s2710_s2 = smov 128   ;;  %s2711_s4 = smov 8  }
   0xa   :  { %52 = vperm.xlu2 %2673, %v19_v4  }
   0xb   :  { %42 = vperm.xlu1 %2672, %v17_v5   ;;  %32 = vperm.xlu0 %2671, %v15_v6  }
  0x13   :  { %62 = vperm.xlu1 %2672, %v21_v7   ;;  %57 = vperm.xlu0 %2671, %v20_v8  }
  0x75   :  { %v28_v10 = vpop.permute.xlu0 %27  ;;  %v38_v11 = vpop.permute.xlu1 %37 }
  0x76   :  { %v2760_v12 = vmul.f32 %v2757_v9, %v28_v10  ;;  %v2765_v15 = vmul.f32 %v2757_v9, %v38_v11 }
  0x78   :  { %4118 = vst [vmem:[#allocation5_spill] sm:$0xff] %v2760_v12  ;;  %v107_v13 = vand.u32 2147483647, %v2760_v12  ;;  %v110_v14 = vand.u32 2139095040, %v2760_v12  ;;  %v420_v20 = vand.u32 2139095040, %v2765_v15 }
  0x7a   :  { %v111_v16 = vshrl.u32 %v110_v14, 23  ;;  %v114_v18 = vand.u32 8388607, %v107_v13  ;;  %v421_v26 = vshrl.u32 %v420_v20, 23 }
  0x7c   :  { %v2613_v17 = vadd.s32 4294967169, %v111_v16  ;;  %v115_v23 = vor.u32 8388608, %v114_v18  ;;  %v2781_v37 = vadd.s32 4294967169, %v421_v26 }
  0x7d   :  { %v33_v19 = vpop.permute.xlu0 %32 }
  0x7e   :  { %v2771_v21 = vmul.f32 %v2757_v9, %v33_v19  ;;  %v117_v22 = vadd.s32 1, %v2613_v17  ;;  %v2774_v29 = vshll.u32 %v115_v23, 8 }
  0x80   :  { %4119 = vst [vmem:[#allocation6_spill] sm:$0xff] %v2771_v21  ;;  %vm118_vm0 = vcmp.gt.s32.totalorder %v117_v22, 0  ;;  %v265_v25 = vand.u32 2139095040, %v2771_v21  ;;  %v262_v30 = vand.u32 2147483647, %v2771_v21  ;;  %v156_v51 = vand.u32 65535, %v2774_v29 }
  0x81   :  { %v119_v24 = vsel %vm118_vm0, %v117_v22, 0  ;;  %v157_v7 = vshrl.u32 %v2774_v29, 16 }
  0x82   :  { %v121_v27 = vand.u32 31, %v119_v24  ;;  %v266_v31 = vshrl.u32 %v265_v25, 23  ;;  %v2777_v32 = vshrl.u32 %v119_v24, 5  ;;  %v2794_v53 = vand.u32 8388607, %v262_v30 }
  0x84   :  { %v122_v28 = vsub.s32 32, %v121_v27  ;;  %v124_v34 = vshll.u32 %v4080_v33, %v121_v27  ;;  %v127_v36 = vshll.u32 %v4078_v35, %v121_v27  ;;  %v130_v40 = vshll.u32 %v4076_v39, %v121_v27 }
  0x85   :  { %v133_v42 = vshll.u32 %v4074_v41, %v121_v27  ;;  %v136_v44 = vshll.u32 %v4072_v43, %v121_v27  ;;  %v2616_v52 = vadd.s32 4294967169, %v266_v31  ;;  %vm139_vm1 = vcmp.lt.s32.totalorder %v2777_v32, 1 }
  0x86   :  { %v125_v38 = vshrl.u32 %v4078_v35, %v122_v28  ;;  %v128_v45 = vshrl.u32 %v4076_v39, %v122_v28  ;;  %v131_v46 = vshrl.u32 %v4074_v41, %v122_v28  ;;  %v134_v47 = vshrl.u32 %v4072_v43, %v122_v28 }
  0x87   :  { %v137_v49 = vshrl.u32 %v4070_v48, %v122_v28  ;;  %vm140_vm2 = vcmp.lt.s32.totalorder %v2777_v32, 2  ;;  %vm142_vm3 = vcmp.lt.s32.totalorder %v2777_v32, 4  ;;  %v272_v58 = vadd.s32 1, %v2616_v52 }
  0x88   :  { %v126_v50 = vor.u32 %v125_v38, %v124_v34  ;;  %v129_v54 = vor.u32 %v128_v45, %v127_v36  ;;  %v132_v55 = vor.u32 %v131_v46, %v130_v40  ;;  %v135_v56 = vor.u32 %v134_v47, %v133_v42 }
  0x89   :  { %v138_v57 = vor.u32 %v137_v49, %v136_v44  ;;  %vm141_vm4 = vcmp.lt.s32.totalorder %v2777_v32, 3  ;;  %v123_v62 = vshrl.u32 %v4080_v33, %v122_v28  ;;  %vm273_vm5 = vcmp.gt.s32.totalorder %v272_v58, 0 }
  0x8a   :  { %v147_v59 = vsel %vm139_vm1, %v126_v50, %v129_v54  ;;  %v148_v60 = vsel %vm142_vm3, %v135_v56, 920167782  ;;  %v151_v61 = vsel %vm139_vm1, %v129_v54, %v132_v55  ;;  %v144_v1 = vsel %vm142_vm3, %v132_v55, 2102212464 }
  0x8b   :  { %v149_v63 = vsel %vm141_vm4, %v132_v55, %v148_v60  ;;  %v152_v0 = vsel %vm142_vm3, %v138_v57, 1326507024  ;;  %v274_v5 = vsel %vm273_vm5, %v272_v58, 0  ;;  %v143_v11 = vsel %vm139_vm1, %v123_v62, %v126_v50 }
  0x8c   :  { %v150_v2 = vsel %vm140_vm2, %v147_v59, %v149_v63  ;;  %v153_v4 = vsel %vm141_vm4, %v135_v56, %v152_v0  ;;  %v270_v17 = vor.u32 8388608, %v2794_v53  ;;  %v145_v18 = vsel %vm141_vm4, %v129_v54, %v144_v1 }
  0x8d   :  { %v154_v6 = vsel %vm140_vm2, %v151_v61, %v153_v4  ;;  %v180_v8 = vand.u32 65535, %v150_v2  ;;  %v181_v10 = vshrl.u32 %v150_v2, 16  ;;  %v276_v22 = vand.u32 31, %v274_v5 }
  0x8e   :  { %v158_v14 = vand.u32 65535, %v154_v6  ;;  %v159_v16 = vshrl.u32 %v154_v6, 16  ;;  %v2819_v26 = vshrl.u32 %v274_v5, 5 }
  0x8f   :  { %v183_v19 = vmul.u32 %v181_v10, %v156_v51  ;;  %v184_v20 = vmul.u32 %v180_v8, %v157_v7  ;;  %v182_v25 = vmul.u32 %v180_v8, %v156_v51  ;;  %v185_v31 = vmul.u32 %v181_v10, %v157_v7 }
  0x90   :  { %v161_v23 = vmul.u32 %v159_v16, %v156_v51  ;;  %v162_v24 = vmul.u32 %v158_v14, %v157_v7  ;;  %v160_v27 = vmul.u32 %v158_v14, %v156_v51  ;;  %v163_v28 = vmul.u32 %v159_v16, %v157_v7 }
  0x91   :  { %v186_v34 = vshll.u32 %v183_v19, 16  ;;  %v187_v38 = vshrl.u32 %v183_v19, 16  ;;  %v188_v40 = vshll.u32 %v184_v20, 16  ;;  %v189_v42 = vshrl.u32 %v184_v20, 16 }
  0x92   :  { %v164_v36 = vshll.u32 %v161_v23, 16  ;;  %v165_v44 = vshrl.u32 %v161_v23, 16  ;;  %v2821_v46 = vsub.s32 32, %v276_v22  ;;  %v166_v47 = vshll.u32 %v162_v24, 16 }
  0x93   :  { %vm190_vm6 = vc.u32 %v182_v25, %v186_v34  ;;  %v192_v45 = vadd.s32 %v186_v34, %v182_v25  ;;  %v279_v54 = vshll.u32 %v4080_v33, %v276_v22  ;;  %v282_v57 = vshll.u32 %v4078_v35, %v276_v22 }
  0x94   :  { %vm168_vm7 = vc.u32 %v160_v27, %v164_v36  ;;  %v170_v49 = vadd.s32 %v164_v36, %v160_v27  ;;  %v191_v50 = vsel %vm190_vm6, 1, %v4084_v3  ;;  %v280_v60 = vshrl.u32 %v4078_v35, %v2821_v46 }
  0x95   :  { %v169_v52 = vsel %vm168_vm7, 1, %v4084_v3  ;;  %v193_v51 = vadd.s32 %v191_v50, %v185_v31  ;;  %vm194_vm8 = vc.u32 %v192_v45, %v188_v40  ;;  %v283_v61 = vshrl.u32 %v4076_v39, %v2821_v46 }
  0x96   :  { %v171_v55 = vadd.s32 %v169_v52, %v163_v28  ;;  %vm172_vm9 = vc.u32 %v170_v49, %v166_v47  ;;  %v195_v56 = vsel %vm194_vm8, 1, %v4084_v3  ;;  %v285_v63 = vshll.u32 %v4076_v39, %v276_v22 }
  0x97   :  { %v173_v58 = vsel %vm172_vm9, 1, %v4084_v3  ;;  %v197_v59 = vadd.s32 %v195_v56, %v193_v51  ;;  %v286_v0 = vshrl.u32 %v4074_v41, %v2821_v46  ;;  %v288_v1 = vshll.u32 %v4074_v41, %v276_v22 }
  0x98   :  { %v175_v62 = vadd.s32 %v173_v58, %v171_v55  ;;  %v281_v4 = vor.u32 %v280_v60, %v279_v54  ;;  %v284_v5 = vor.u32 %v283_v61, %v282_v57  ;;  %v289_v6 = vshrl.u32 %v4072_v43, %v2821_v46 }
  0x99   :  { %v198_v2 = vadd.s32 %v197_v59, %v187_v38  ;;  %v167_v7 = vshrl.u32 %v162_v24, 16  ;;  %v291_v10 = vshll.u32 %v4072_v43, %v276_v22  ;;  %v292_v14 = vshrl.u32 %v4070_v48, %v2821_v46 }
  0x9a   :  { %v176_v8 = vadd.s32 %v175_v62, %v165_v44  ;;  %v146_v16 = vsel %vm140_vm2, %v143_v11, %v145_v18  ;;  %v287_v20 = vor.u32 %v286_v0, %v285_v63  ;;  %v290_v23 = vor.u32 %v289_v6, %v288_v1 }
  0x9b   :  { %v199_v19 = vadd.s32 %v198_v2, %v189_v42  ;;  %v2846_v27 = vadd.s32 %v192_v45, %v188_v40  ;;  %v293_v28 = vor.u32 %v292_v14, %v291_v10  ;;  %vm294_vm10 = vcmp.lt.s32.totalorder %v2819_v26, 1 }
  0x9c   :  { %v2844_v25 = vadd.s32 %v176_v8, %v167_v7  ;;  %vm297_vm11 = vcmp.lt.s32.totalorder %v2819_v26, 4  ;;  %v302_v22 = vsel %vm294_vm10, %v281_v4, %v284_v5  ;;  %v427_v31 = vadd.s32 1, %v2781_v37 }
  0x9d   :  { %v203_v24 = vadd.s32 1, %v199_v19  ;;  %v200_v32 = vmul.u32 %v2774_v29, %v146_v16  ;;  %vm296_vm13 = vcmp.lt.s32.totalorder %v2819_v26, 3  ;;  %v303_v11 = vsel %vm297_vm11, %v290_v23, 920167782 }
  0x9e   :  { %vm202_vm12 = vc.u32 %v2844_v25, %v2846_v27  ;;  %vm295_vm14 = vcmp.lt.s32.totalorder %v2819_v26, 2  ;;  %v304_v34 = vsel %vm296_vm13, %v287_v20, %v303_v11  ;;  %v306_v36 = vsel %vm294_vm10, %v284_v5, %v287_v20 }
  0x9f   :  { %v204_v18 = vsel %vm202_vm12, %v203_v24, %v199_v19  ;;  %v305_v29 = vsel %vm295_vm14, %v302_v22, %v304_v34  ;;  %v307_v38 = vsel %vm297_vm11, %v293_v28, 1326507024  ;;  %v2870_v40 = vshll.u32 %v270_v17, 8 }
  0xa0   :  { %v205_v37 = vadd.s32 %v204_v18, %v200_v32  ;;  %v308_v42 = vsel %vm296_vm13, %v290_v23, %v307_v38  ;;  %v336_v44 = vshrl.u32 %v305_v29, 16  ;;  %vm428_vm15 = vcmp.gt.s32.totalorder %v427_v31, 0 }
  0xa1   :  { %v309_v47 = vsel %vm295_vm14, %v306_v36, %v308_v42  ;;  %v311_v49 = vand.u32 65535, %v2870_v40  ;;  %v335_v50 = vand.u32 65535, %v305_v29  ;;  %v312_v52 = vshrl.u32 %v2870_v40, 16 }
  0xa2   :  { %v206_v45 = vadd.s32 536870912, %v205_v37  ;;  %v313_v51 = vand.u32 65535, %v309_v47  ;;  %v314_v54 = vshrl.u32 %v309_v47, 16  ;;  %v278_v53 = vshrl.u32 %v4080_v33, %v2821_v46 }
  0xa3   :  { %v299_v17 = vsel %vm297_vm11, %v287_v20, 2102212464  ;;  %v338_v56 = vmul.u32 %v336_v44, %v311_v49  ;;  %v429_v59 = vsel %vm428_vm15, %v427_v31, 0  ;;  %v339_v62 = vmul.u32 %v335_v50, %v312_v52 }
  0xa4   :  { %v2878_v55 = vshrl.u32 %v206_v45, 30  ;;  %v316_v57 = vmul.u32 %v314_v54, %v311_v49  ;;  %v317_v58 = vmul.u32 %v313_v51, %v312_v52  ;;  %v298_v61 = vsel %vm294_vm10, %v278_v53, %v281_v4 }
  0xa5   :  { %v300_v63 = vsel %vm296_vm13, %v284_v5, %v299_v17  ;;  %v315_v0 = vmul.u32 %v313_v51, %v311_v49  ;;  %v341_v2 = vshll.u32 %v338_v56, 16  ;;  %v318_v6 = vmul.u32 %v314_v54, %v312_v52 }
  0xa6   :  { %v208_v60 = vshll.u32 %v2878_v55, 30  ;;  %v319_v1 = vshll.u32 %v316_v57, 16  ;;  %v337_v7 = vmul.u32 %v335_v50, %v311_v49  ;;  %v431_v8 = vand.u32 31, %v429_v59 }
  0xa7   :  { %v321_v10 = vshll.u32 %v317_v58, 16  ;;  %v340_v16 = vmul.u32 %v336_v44, %v312_v52  ;;  %v343_v20 = vshll.u32 %v339_v62, 16  ;;  %v320_v24 = vshrl.u32 %v316_v57, 16 }
  0xa8   :  { %v2889_v46 = vsub.s32 %v205_v37, %v208_v60  ;;  %vm323_vm0 = vc.u32 %v315_v0, %v319_v1  ;;  %v325_v14 = vadd.s32 %v319_v1, %v315_v0  ;;  %vm345_vm3 = vc.u32 %v337_v7, %v341_v2 }
  0xa9   :  { %v324_v19 = vsel %vm323_vm0, 1, %v4084_v3  ;;  %v347_v23 = vadd.s32 %v341_v2, %v337_v7  ;;  %v346_v31 = vsel %vm345_vm3, 1, %v4084_v3  ;;  %v322_v34 = vshrl.u32 %v317_v58, 16 }
  0xaa   :  { %vm210_vm1 = vcmp.lt.s32.totalorder %v2889_v46, 0  ;;  %v211_v4 = vsub.s32 0, %v2889_v46  ;;  %v326_v5 = vadd.s32 %v324_v19, %v318_v6  ;;  %vm327_vm2 = vc.u32 %v325_v14, %v321_v10 }
  0xab   :  { %v328_v22 = vsel %vm327_vm2, 1, %v4084_v3  ;;  %v348_v18 = vadd.s32 %v346_v31, %v340_v16  ;;  %vm349_vm4 = vc.u32 %v347_v23, %v343_v20  ;;  %v4068_v37 = vand.u32 2147483647, %v2765_v15 }
  0xac   :  { %v212_v28 = vsel %vm210_vm1, %v211_v4, %v2889_v46  ;;  %v330_v11 = vadd.s32 %v328_v22, %v326_v5  ;;  %v350_v36 = vsel %vm349_vm4, 1, %v4084_v3  ;;  %v342_v42 = vshrl.u32 %v338_v56, 16 }
  0xad   :  { %v213_v32 = vclz %v212_v28  ;;  %v352_v44 = vadd.s32 %v350_v36, %v348_v18  ;;  %v301_v45 = vsel %vm295_vm14, %v298_v61, %v300_v63  ;;  %v2901_v47 = vsub.s32 32, %v431_v8 }
  0xae   :  { %v331_v38 = vadd.s32 %v330_v11, %v320_v24  ;;  %v344_v50 = vshrl.u32 %v339_v62, 16  ;;  %v2905_v51 = vadd.s32 %v347_v23, %v343_v20  ;;  %v424_v53 = vand.u32 8388607, %v4068_v37 }
  0xaf   :  { %v2614_v29 = vadd.s32 4294967294, %v213_v32  ;;  %v353_v52 = vadd.s32 %v352_v44, %v342_v42  ;;  %v2909_v17 = vshrl.u32 %v429_v59, 5  ;;  %v438_v56 = vshrl.u32 %v4076_v39, %v2901_v47 }
  0xb0   :  { %v2903_v49 = vadd.s32 %v331_v38, %v322_v34  ;;  %v355_v57 = vmul.u32 %v2870_v40, %v301_v45  ;;  %v437_v58 = vshll.u32 %v4078_v35, %v431_v8  ;;  %v440_v61 = vshll.u32 %v4076_v39, %v431_v8 }
  0xb1   :  { %vm2615_vm5 = vcmp.lt.s32.totalorder %v2614_v29, 0  ;;  %v354_v54 = vadd.s32 %v353_v52, %v344_v50  ;;  %v441_v62 = vshrl.u32 %v4074_v41, %v2901_v47  ;;  %v443_v59 = vshll.u32 %v4074_v41, %v431_v8 }
  0xb2   :  { %v216_v26 = vsel %vm2615_vm5, 0, %v2614_v29  ;;  %vm357_vm6 = vc.u32 %v2903_v49, %v2905_v51  ;;  %v435_v63 = vshrl.u32 %v4078_v35, %v2901_v47  ;;  %v444_v0 = vshrl.u32 %v4072_v43, %v2901_v47 }
  0xb3   :  { %v358_v60 = vadd.s32 1, %v354_v54  ;;  %v446_v40 = vshll.u32 %v4072_v43, %v431_v8  ;;  %v447_v1 = vshrl.u32 %v4070_v48, %v2901_v47  ;;  %v221_v2 = vsub.s32 4294967266, %v216_v26 }
  0xb4   :  { %v2928_v7 = vor.u32 %v438_v56, %v437_v58  ;;  %v2930_v10 = vor.u32 %v441_v62, %v440_v61  ;;  %v434_v16 = vshll.u32 %v4080_v33, %v431_v8  ;;  %v445_v4 = vor.u32 %v444_v0, %v443_v59 }
  0xb5   :  { %v359_v6 = vsel %vm357_vm6, %v358_v60, %v354_v54  ;;  %v448_v19 = vor.u32 %v447_v1, %v446_v40  ;;  %v425_v20 = vor.u32 8388608, %v424_v53  ;;  %vm449_vm7 = vcmp.lt.s32.totalorder %v2909_v17, 1 }
  0xb6   :  { %v360_v14 = vadd.s32 %v359_v6, %v355_v57  ;;  %v2933_v23 = vor.u32 %v435_v63, %v434_v16  ;;  %vm452_vm8 = vcmp.lt.s32.totalorder %v2909_v17, 4  ;;  %v222_v28 = vadd.s32 127, %v221_v2 }
  0xb7   :  { %v458_v24 = vsel %vm452_vm8, %v445_v4, 920167782  ;;  %v461_v22 = vsel %vm449_vm7, %v2928_v7, %v2930_v10  ;;  %vm451_vm9 = vcmp.lt.s32.totalorder %v2909_v17, 3  ;;  %v462_v31 = vsel %vm452_vm8, %v448_v19, 1326507024 }
  0xb8   :  { %v361_v5 = vadd.s32 536870912, %v360_v14  ;;  %v217_v32 = vsub.s32 32, %v216_v26  ;;  %vm450_vm10 = vcmp.lt.s32.totalorder %v2909_v17, 2  ;;  %v463_v11 = vsel %vm451_vm9, %v445_v4, %v462_v31 }
  0xb9   :  { %v2951_v18 = vshll.u32 %v425_v20, 8  ;;  %v457_v36 = vsel %vm449_vm7, %v2933_v23, %v2928_v7  ;;  %v459_v29 = vsel %vm451_vm9, %v2930_v10, %v458_v24  ;;  %v464_v38 = vsel %vm450_vm10, %v461_v22, %v463_v11 }
  0xba   :  { %v2943_v8 = vshrl.u32 %v361_v5, 30  ;;  %v201_v42 = vadd.s32 %v2846_v27, %v2844_v25  ;;  %v223_v44 = vshll.u32 %v222_v28, 23  ;;  %v468_v45 = vand.u32 65535, %v464_v38 }
  0xbb   :  { %v469_v52 = vshrl.u32 %v464_v38, 16  ;;  %v460_v53 = vsel %vm450_vm10, %v457_v36, %v459_v29  ;;  %v466_v56 = vand.u32 65535, %v2951_v18  ;;  %v467_v57 = vshrl.u32 %v2951_v18, 16  ;;  %v43_v36 = vpop.permute.xlu1 %42 }
  0xbc   :  { %v363_v34 = vshll.u32 %v2943_v8, 30  ;;  %v219_v54 = vshrl.u32 %v201_v42, %v217_v32  ;;  %v218_v60 = vshll.u32 %v2889_v46, %v216_v26  ;;  %v224_v25 = vor.u32 4788187, %v223_v44 }
  0xbd   :  { %v471_v27 = vmul.u32 %v469_v52, %v466_v56  ;;  %v472_v61 = vmul.u32 %v468_v45, %v467_v57  ;;  %v491_v62 = vshrl.u32 %v460_v53, 16  ;;  %v470_v0 = vmul.u32 %v468_v45, %v466_v56 }
  0xbe   :  { %v2965_v50 = vsub.s32 %v360_v14, %v363_v34  ;;  %v220_v59 = vor.u32 %v219_v54, %v218_v60  ;;  %v490_v1 = vand.u32 65535, %v460_v53  ;;  %v225_v2 = vand.u32 2147483647, %v224_v25  ;;  %v48_v34 = vpop.permute.xlu2 %47 }
  0xbf   :  { %v474_v40 = vshll.u32 %v471_v27, 16  ;;  %v473_v6 = vmul.u32 %v469_v52, %v467_v57  ;;  %v476_v14 = vshll.u32 %v472_v61, 16  ;;  %v493_v20 = vmul.u32 %v491_v62, %v466_v56 }
  0xc0   :  { %vm365_vm11 = vcmp.lt.s32.totalorder %v2965_v50, 0  ;;  %v366_v58 = vsub.s32 0, %v2965_v50  ;;  %v227_v46 = vcvt.s32.f32 %v220_v59  ;;  %v494_v5 = vmul.u32 %v490_v1, %v467_v57 }
  0xc1   :  { %vm478_vm12 = vc.u32 %v470_v0, %v474_v40  ;;  %v480_v19 = vadd.s32 %v474_v40, %v470_v0  ;;  %v496_v28 = vshll.u32 %v493_v20, 16  ;;  %v492_v32 = vmul.u32 %v490_v1, %v466_v56 }
  0xc2   :  { %v367_v63 = vsel %vm365_vm11, %v366_v58, %v2965_v50  ;;  %v479_v4 = vsel %vm478_vm12, 1, %v4084_v3  ;;  %v228_v24 = vmul.f32 %v227_v46, %v225_v2  ;;  %v498_v29 = vshll.u32 %v494_v5, 16 }
  0xc3   :  { %v368_v16 = vclz %v367_v63  ;;  %v481_v26 = vadd.s32 %v479_v4, %v473_v6  ;;  %vm482_vm13 = vc.u32 %v480_v19, %v476_v14  ;;  %vm500_vm14 = vc.u32 %v492_v32, %v496_v28 }
  0xc4   :  { %v483_v31 = vsel %vm482_vm13, 1, %v4084_v3  ;;  %v502_v38 = vadd.s32 %v496_v28, %v492_v32  ;;  %v229_v42 = vxor.u32 2147483648, %v228_v24  ;;  %v475_v44 = vshrl.u32 %v471_v27, 16 }
  0xc5   :  { %v2617_v22 = vadd.s32 4294967294, %v368_v16  ;;  %v485_v11 = vadd.s32 %v483_v31, %v481_v26  ;;  %v495_v45 = vmul.u32 %v491_v62, %v467_v57  ;;  %v501_v52 = vsel %vm500_vm14, 1, %v4084_v3 }
  0xc6   :  { %vm504_vm0 = vc.u32 %v502_v38, %v498_v29  ;;  %v2979_v54 = vmul.f32 %v2757_v9, %v43_v36  ;;  %vm109_vm1 = vcmp.lt.s32.totalorder %v2760_v12, 0  ;;  %v454_v56 = vsel %vm452_vm8, %v2930_v10, 2102212464 }
  0xc7   :  { %vm2618_vm15 = vcmp.lt.s32.totalorder %v2617_v22, 0  ;;  %v486_v53 = vadd.s32 %v485_v11, %v475_v44  ;;  %v503_v58 = vadd.s32 %v501_v52, %v495_v45  ;;  %v505_v60 = vsel %vm504_vm0, 1, %v4084_v3 }
  0xc8   :  { %v230_v25 = vsel %vm109_vm1, %v229_v42, %v228_v24  ;;  %v371_v57 = vsel %vm2618_vm15, 0, %v2617_v22  ;;  %v433_v27 = vshrl.u32 %v4080_v33, %v2901_v47  ;;  %v477_v62 = vshrl.u32 %v472_v61, 16 }
  0xc9   :  { %v73_v59 = vlaneseq  ;;  %vm2992_vm2 = vcmp.le.f32.partialorder %v107_v13, 0.7853982  ;;  %v497_v0 = vshrl.u32 %v493_v20, 16  ;;  %v507_v10 = vadd.s32 %v505_v60, %v503_v58 }
  0xca   :  { %v453_v40 = vsel %vm449_vm7, %v433_v27, %v2933_v23  ;;  %v455_v1 = vsel %vm451_vm9, %v2928_v7, %v454_v56  ;;  %v3002_v2 = vadd.s32 %v486_v53, %v477_v62  ;;  %v575_v47 = vand.u32 2139095040, %v2979_v54  ;;  %v53_v23 = vpop.permute.xlu2 %52 }
  0xcb   :  { %v3008_v13 = vsel %vm2992_vm2, %v2760_v12, %v230_v25  ;;  %v376_v61 = vsub.s32 4294967266, %v371_v57  ;;  %v499_v6 = vshrl.u32 %v494_v5, 16  ;;  %v508_v14 = vadd.s32 %v507_v10, %v497_v0 }
  0xcc   :  { %v3010_v16 = vadd.s32 %v502_v38, %v498_v29  ;;  %v576_v4 = vshrl.u32 %v575_v47, 23  ;;  %v456_v19 = vsel %vm450_vm10, %v453_v40, %v455_v1  ;;  %v3016_v20 = vmul.f32 %v3008_v13, %v3008_v13 }
  0xcd   :  { %v509_v7 = vadd.s32 %v508_v14, %v499_v6  ;;  %v372_v46 = vsub.s32 32, %v371_v57  ;;  %v3021_v5 = vmul.f32 %v2757_v9, %v48_v34  ;;  %v3023_v28 = vshrl.u32 %v73_v59, 7 }
  0xce   :  { %vm512_vm3 = vc.u32 %v3002_v2, %v3010_v16  ;;  %v2622_v26 = vadd.s32 4294967169, %v576_v4  ;;  %v377_v24 = vadd.s32 127, %v376_v61  ;;  %v3026_v17 = vmul.f32 %v2757_v9, %v53_v23 }
  0xcf   :  { %4122 = vst [vmem:[#allocation7_spill] sm:$0xff] %v3023_v28  ;;  %v513_v22 = vadd.s32 1, %v509_v7  ;;  %v356_v31 = vadd.s32 %v2905_v51, %v2903_v49  ;;  %v510_v32 = vmul.u32 %v2951_v18, %v456_v19  ;;  %v3032_v36 = vadd.s32 8, %v3023_v28 }
  0xd0   :  { %v582_v11 = vadd.s32 1, %v2622_v26  ;;  %v3035_v29 = vadd.s32 16, %v3023_v28  ;;  %v231_v34 = vsub.s32 4, %v2878_v55  ;;  %v243_v42 = vmul.f32 -0.00019511016, %v3016_v20 }
  0xd1   :  { %4123 = vst [vmem:[#allocation8_spill] sm:$0xff] %v3032_v36  ;;  %v514_v38 = vsel %vm512_vm3, %v513_v22, %v509_v7  ;;  %v374_v44 = vshrl.u32 %v356_v31, %v372_v46  ;;  %v3040_v45 = vadd.s32 24, %v3023_v28  ;;  %v3043_v49 = vadd.s32 32, %v3023_v28 }
  0xd2   :  { %4124 = vst [vmem:[#allocation9_spill] sm:$0xff] %v3035_v29  ;;  %v515_v9 = vadd.s32 %v514_v38, %v510_v32  ;;  %vm583_vm4 = vcmp.gt.s32.totalorder %v582_v11, 0  ;;  %v378_v51 = vshll.u32 %v377_v24, 23  ;;  %v373_v52 = vshll.u32 %v2965_v50, %v371_v57 }
  0xd3   :  { %4125 = vst [vmem:[#allocation10_spill] sm:$0xff] %v3040_v45  ;;  %v584_v18 = vsel %vm583_vm4, %v582_v11, 0  ;;  %v4067_v56 = vand.u32 2147483647, %v2979_v54  ;;  %v3048_v60 = vadd.s32 40, %v3023_v28  ;;  %v3051_v25 = vadd.s32 48, %v3023_v28 }
  0xd4   :  { %4126 = vst [vmem:[#allocation11_spill] sm:$0xff] %v3043_v49  ;;  %v516_v53 = vadd.s32 536870912, %v515_v9  ;;  %v586_v58 = vand.u32 31, %v584_v18  ;;  %v730_v62 = vand.u32 2139095040, %v3021_v5  ;;  %v232_v59 = vsel %vm109_vm1, %v231_v34, %v2878_v55 }
  0xd5   :  { %4127 = vst [vmem:[#allocation12_spill] sm:$0xff] %v3048_v60  ;;  %v244_v0 = vadd.f32 0.008332121, %v243_v42  ;;  %v375_v50 = vor.u32 %v374_v44, %v373_v52  ;;  %v379_v1 = vor.u32 4788187, %v378_v51  ;;  %v3073_v19 = vsel %vm2992_vm2, 0, %v232_v59 }
  0xd6   :  { %4128 = vst [vmem:[#allocation13_spill] sm:$0xff] %v3051_v25  ;;  %v3058_v57 = vshrl.u32 %v516_v53, 30  ;;  %v3062_v47 = vsub.s32 32, %v586_v58  ;;  %v579_v55 = vand.u32 8388607, %v4067_v56  ;;  %v731_v7 = vshrl.u32 %v730_v62, 23 }
  0xd7   :  { %v236_v46 = vmul.f32 -0.001358992, %v3016_v20  ;;  %v245_v26 = vmul.f32 %v244_v0, %v3016_v20  ;;  %v382_v24 = vcvt.s32.f32 %v375_v50  ;;  %v380_v31 = vand.u32 2147483647, %v379_v1 }
  0xd8   :  { %v518_v14 = vshll.u32 %v3058_v57, 30  ;;  %v590_v32 = vshrl.u32 %v4078_v35, %v3062_v47  ;;  %v593_v11 = vshrl.u32 %v4076_v39, %v3062_v47  ;;  %v599_v63 = vshrl.u32 %v4072_v43, %v3062_v47 }
  0xd9   :  { %v580_v38 = vor.u32 8388608, %v579_v55  ;;  %v596_v42 = vshrl.u32 %v4074_v41, %v3062_v47  ;;  %v589_v44 = vshll.u32 %v4080_v33, %v586_v58  ;;  %v598_v51 = vshll.u32 %v4074_v41, %v586_v58 }
  0xda   :  { %v3077_v22 = vsub.s32 %v515_v9, %v518_v14  ;;  %v592_v9 = vshll.u32 %v4078_v35, %v586_v58  ;;  %v2625_v52 = vadd.s32 4294967169, %v731_v7  ;;  %v3093_v62 = vshrl.u32 %v584_v18, 5 }
  0xdb   :  { %v595_v59 = vshll.u32 %v4076_v39, %v586_v58  ;;  %v602_v0 = vshrl.u32 %v4070_v48, %v3062_v47  ;;  %v591_v1 = vor.u32 %v590_v32, %v589_v44  ;;  %v600_v55 = vor.u32 %v599_v63, %v598_v51 }
  0xdc   :  { %vm520_vm5 = vcmp.lt.s32.totalorder %v3077_v22, 0  ;;  %v521_v34 = vsub.s32 0, %v3077_v22  ;;  %v594_v14 = vor.u32 %v593_v11, %v592_v9  ;;  %v237_v23 = vadd.f32 0.041655596, %v236_v46 }
  0xdd   :  { %v246_v4 = vadd.f32 -0.16666654, %v245_v26  ;;  %v597_v61 = vor.u32 %v596_v42, %v595_v59  ;;  %v601_v40 = vshll.u32 %v4072_v43, %v586_v58  ;;  %v383_v10 = vmul.f32 %v382_v24, %v380_v31 }
  0xde   :  { %v522_v53 = vsel %vm520_vm5, %v521_v34, %v3077_v22  ;;  %v3100_v18 = vshll.u32 %v580_v38, 8  ;;  %vm264_vm6 = vcmp.lt.s32.totalorder %v2771_v21, 0  ;;  %vm604_vm7 = vcmp.lt.s32.totalorder %v3093_v62, 1 }
  0xdf   :  { %v523_v50 = vclz %v522_v53  ;;  %v603_v27 = vor.u32 %v602_v0, %v601_v40  ;;  %vm607_vm8 = vcmp.lt.s32.totalorder %v3093_v62, 4  ;;  %v737_v32 = vadd.s32 1, %v2625_v52 }
  0xe0   :  { %vm606_vm10 = vcmp.lt.s32.totalorder %v3093_v62, 3  ;;  %v612_v58 = vsel %vm604_vm7, %v591_v1, %v594_v14  ;;  %v613_v46 = vsel %vm607_vm8, %v600_v55, 920167782  ;;  %v3111_v26 = vmul.f32 %v237_v23, %v3016_v20 }
  0xe1   :  { %v2620_v34 = vadd.s32 4294967294, %v523_v50  ;;  %v3114_v24 = vmul.f32 %v246_v4, %v3016_v20  ;;  %v614_v31 = vsel %vm606_vm10, %v597_v61, %v613_v46  ;;  %vm605_vm11 = vcmp.lt.s32.totalorder %v3093_v62, 2 }
  0xe2   :  { %v616_v63 = vsel %vm604_vm7, %v594_v14, %v597_v61  ;;  %v4069_v38 = vand.u32 2147483647, %v3021_v5  ;;  %v384_v42 = vxor.u32 2147483648, %v383_v10  ;;  %v615_v23 = vsel %vm605_vm11, %v612_v58, %v614_v31 }
  0xe3   :  { %vm2621_vm9 = vcmp.lt.s32.totalorder %v2620_v34, 0  ;;  %v617_v4 = vsel %vm607_vm8, %v603_v27, 1326507024  ;;  %v621_v44 = vand.u32 65535, %v3100_v18  ;;  %v622_v51 = vshrl.u32 %v3100_v18, 16 }
  0xe4   :  { %v3116_v40 = vsel %vm2621_vm9, 0, %v2620_v34  ;;  %v618_v9 = vsel %vm606_vm10, %v600_v55, %v617_v4  ;;  %v645_v52 = vand.u32 65535, %v615_v23  ;;  %vm738_vm12 = vcmp.gt.s32.totalorder %v737_v32, 0 }
  0xe5   :  { %v531_v11 = vsub.s32 4294967266, %v3116_v40  ;;  %vm3135_vm13 = vcmp.le.f32.partialorder %v262_v30, 0.7853982  ;;  %v588_v59 = vshrl.u32 %v4080_v33, %v3062_v47  ;;  %v609_v27 = vsel %vm607_vm8, %v597_v61, 2102212464 }
  0xe6   :  { %v619_v0 = vsel %vm605_vm11, %v616_v63, %v618_v9  ;;  %v646_v50 = vshrl.u32 %v615_v23, 16  ;;  %v527_v55 = vsub.s32 32, %v3116_v40  ;;  %v511_v30 = vadd.s32 %v3010_v16, %v3002_v2 }
  0xe7   :  { %v532_v34 = vadd.s32 127, %v531_v11  ;;  %v623_v58 = vand.u32 65535, %v619_v0  ;;  %v624_v46 = vshrl.u32 %v619_v0, 16  ;;  %v649_v4 = vmul.u32 %v645_v52, %v622_v51 }
  0xe8   :  { %v648_v31 = vmul.u32 %v646_v50, %v621_v44  ;;  %v3150_v47 = vand.u32 8388607, %v4069_v38  ;;  %v385_v61 = vsel %vm264_vm6, %v384_v42, %v383_v10  ;;  %v608_v63 = vsel %vm604_vm7, %v588_v59, %v591_v1 }
  0xe9   :  { %v610_v11 = vsel %vm606_vm10, %v594_v14, %v609_v27  ;;  %v626_v23 = vmul.u32 %v624_v46, %v621_v44  ;;  %v627_v9 = vmul.u32 %v623_v58, %v622_v51  ;;  %v647_v0 = vmul.u32 %v645_v52, %v621_v44 }
  0xea   :  { %v651_v6 = vshll.u32 %v648_v31, 16  ;;  %v739_v2 = vsel %vm738_vm12, %v737_v32, 0  ;;  %v529_v16 = vshrl.u32 %v511_v30, %v527_v55  ;;  %v533_v56 = vshll.u32 %v532_v34, 23 }
  0xeb   :  { %v625_v37 = vmul.u32 %v623_v58, %v621_v44  ;;  %v629_v38 = vshll.u32 %v626_v23, 16  ;;  %v628_v7 = vmul.u32 %v624_v46, %v622_v51  ;;  %v650_v48 = vmul.u32 %v646_v50, %v622_v51 }
  0xec   :  { %v653_v43 = vshll.u32 %v649_v4, 16  ;;  %vm655_vm14 = vc.u32 %v647_v0, %v651_v6  ;;  %v631_v10 = vshll.u32 %v627_v9, 16  ;;  %v657_v59 = vadd.s32 %v651_v6, %v647_v0 }
  0xed   :  { %vm633_vm15 = vc.u32 %v625_v37, %v629_v38  ;;  %v635_v1 = vadd.s32 %v629_v38, %v625_v37  ;;  %v656_v42 = vsel %vm655_vm14, 1, %v4084_v3  ;;  %v741_v27 = vand.u32 31, %v739_v2 }
  0xee   :  { %v634_v14 = vsel %vm633_vm15, 1, %v4084_v3  ;;  %v658_v52 = vadd.s32 %v656_v42, %v650_v48  ;;  %v3164_v32 = vsel %vm3135_vm13, %v2771_v21, %v385_v61  ;;  %v534_v44 = vor.u32 4788187, %v533_v56 }
  0xef   :  { %v636_v55 = vadd.s32 %v634_v14, %v628_v7  ;;  %vm637_vm0 = vc.u32 %v635_v1, %v631_v10  ;;  %v528_v51 = vshll.u32 %v3077_v22, %v3116_v40  ;;  %vm659_vm1 = vc.u32 %v657_v59, %v653_v43 }
  0xf0   :  { %v638_v37 = vsel %vm637_vm0, 1, %v4084_v3  ;;  %v3169_v38 = vsub.s32 32, %v741_v27  ;;  %v611_v48 = vsel %vm605_vm11, %v608_v63, %v610_v11  ;;  %v630_v6 = vshrl.u32 %v626_v23, 16 }
  0xf1   :  { %v640_v50 = vadd.s32 %v638_v37, %v636_v55  ;;  %v660_v34 = vsel %vm659_vm1, 1, %v4084_v3  ;;  %v530_v58 = vor.u32 %v529_v16, %v528_v51  ;;  %v652_v46 = vshrl.u32 %v648_v31, 16 }
  0xf2   :  { %v662_v56 = vadd.s32 %v660_v34, %v658_v52  ;;  %v3174_v7 = vshrl.u32 %v739_v2, 5  ;;  %v535_v30 = vand.u32 2147483647, %v534_v44  ;;  %v632_v61 = vshrl.u32 %v627_v9, 16 }
  0xf3   :  { %v641_v22 = vadd.s32 %v640_v50, %v630_v6  ;;  %v654_v40 = vshrl.u32 %v649_v4, 16  ;;  %v3176_v0 = vadd.s32 %v657_v59, %v653_v43  ;;  %v744_v1 = vshll.u32 %v4080_v33, %v741_v27 }
  0xf4   :  { %v663_v10 = vadd.s32 %v662_v56, %v652_v46  ;;  %v745_v62 = vshrl.u32 %v4078_v35, %v3169_v38  ;;  %v747_v11 = vshll.u32 %v4078_v35, %v741_v27  ;;  %v748_v31 = vshrl.u32 %v4076_v39, %v3169_v38 }
  0xf5   :  { %v3181_v63 = vadd.s32 %v641_v22, %v632_v61  ;;  %v750_v23 = vshll.u32 %v4076_v39, %v741_v27  ;;  %v751_v43 = vshrl.u32 %v4074_v41, %v3169_v38  ;;  %v753_v4 = vshll.u32 %v4074_v41, %v741_v27 }
  0xf6   :  { %v664_v9 = vadd.s32 %v663_v10, %v654_v40  ;;  %v4131_v2 = vmov 920167782   ;;  %v537_v42 = vcvt.s32.f32 %v530_v58  ;;  %v665_v14 = vmul.u32 %v3100_v18, %v611_v48 }
  0xf7   :  { %v754_v16 = vshrl.u32 %v4131_v2, %v3169_v38  ;;  %vm667_vm2 = vc.u32 %v3181_v63, %v3176_v0  ;;  %v735_v59 = vor.u32 8388608, %v3150_v47  ;;  %v756_v55 = vshll.u32 %v4131_v2, %v741_v27 }
  0xf8   :  { %v668_v52 = vadd.s32 1, %v664_v9  ;;  %v4132_v51 = vmov 1326507024   ;;  %v538_v6 = vmul.f32 %v537_v42, %v535_v30  ;;  %v3199_v50 = vor.u32 %v745_v62, %v744_v1 }
  0xf9   :  { %v755_v44 = vor.u32 %v754_v16, %v753_v4  ;;  %v757_v37 = vshrl.u32 %v4132_v51, %v3169_v38  ;;  %v3201_v34 = vor.u32 %v748_v31, %v747_v11  ;;  %vm759_vm3 = vcmp.lt.s32.totalorder %v3174_v7, 1 }
  0xfa   :  { %v669_v18 = vsel %vm667_vm2, %v668_v52, %v664_v9  ;;  %v3204_v48 = vor.u32 %v751_v43, %v750_v23  ;;  %vm762_vm4 = vcmp.lt.s32.totalorder %v3174_v7, 4  ;;  %v3209_v47 = vmul.f32 %v3164_v32, %v3164_v32 }
  0xfb   :  { %v758_v58 = vor.u32 %v757_v37, %v756_v55  ;;  %vm419_vm5 = vcmp.lt.s32.totalorder %v2765_v15, 0  ;;  %v670_v27 = vadd.s32 %v669_v18, %v665_v14  ;;  %vm761_vm7 = vcmp.lt.s32.totalorder %v3174_v7, 3 }
  0xfc   :  { %v239_v46 = vadd.f32 -0.4999988, %v3111_v26  ;;  %v248_v56 = vadd.f32 1.0, %v3114_v24  ;;  %v251_v30 = vadd.s32 3, %v3073_v19  ;;  %v768_v61 = vsel %vm762_vm4, %v755_v44, 920167782 }
  0xfd   :  { %v4133_v22 = vsub.s32 4, %v2943_v8  ;;  %v671_v10 = vadd.s32 536870912, %v670_v27  ;;  %vm760_vm8 = vcmp.lt.s32.totalorder %v3174_v7, 2  ;;  %v767_v26 = vsel %vm759_vm3, %v3199_v50, %v3201_v34 }
  0xfe   :  { %v539_v24 = vxor.u32 2147483648, %v538_v6  ;;  %v769_v1 = vsel %vm761_vm7, %v3204_v48, %v768_v61  ;;  %v772_v62 = vsel %vm762_vm4, %v758_v58, 1326507024  ;;  %v3233_v11 = vshll.u32 %v735_v59, 8 }
  0xff   :  { %v387_v40 = vsel %vm264_vm6, %v4133_v22, %v2943_v8  ;;  %v391_v8 = vmul.f32 -0.001358992, %v3209_v47  ;;  %v4134_v31 = vand.u32 2147483647, %v2765_v15  ;;  %v3242_v9 = vshrl.u32 %v671_v10, 30 }
 0x100   :  { %v771_v43 = vsel %vm759_vm3, %v3201_v34, %v3204_v48  ;;  %v240_v4 = vmul.f32 %v239_v46, %v3016_v20  ;;  %v3250_v16 = vmul.f32 %v248_v56, %v3008_v13  ;;  %v770_v42 = vsel %vm760_vm8, %v767_v26, %v769_v1 }
 0x101   :  { %vm3238_vm6 = vcmp.le.f32.partialorder %v4134_v31, 0.7853982  ;;  %v773_v14 = vsel %vm761_vm7, %v755_v44, %v772_v62  ;;  %v3256_v59 = vand.u32 3, %v251_v30  ;;  %v3260_v52 = vsel %vm3135_vm13, 0, %v387_v40 }
 0x102   :  { %4137 = vst [vmem:[#allocation14_spill] sm:$0xff] %v3250_v16  ;;  %v398_v55 = vmul.f32 -0.00019511016, %v3209_v47  ;;  %v673_v37 = vshll.u32 %v3242_v9, 30  ;;  %v540_v13 = vsel %vm419_vm5, %v539_v24, %v538_v6  ;;  %v774_v20 = vsel %vm760_vm8, %v771_v43, %v773_v14 }
 0x103   :  { %v776_v18 = vand.u32 65535, %v3233_v11  ;;  %v777_v44 = vshrl.u32 %v3233_v11, 16  ;;  %v392_v58 = vadd.f32 0.041655596, %v391_v8  ;;  %v800_v53 = vand.u32 65535, %v770_v42 }
 0x104   :  { %v3270_v46 = vsub.s32 %v670_v27, %v673_v37  ;;  %v801_v56 = vshrl.u32 %v770_v42, 16  ;;  %v3272_v30 = vadd.f32 1.0, %v240_v4  ;;  %v778_v22 = vand.u32 65535, %v774_v20 }
 0x105   :  { %v779_v40 = vshrl.u32 %v774_v20, 16  ;;  %v399_v10 = vadd.f32 0.008332121, %v398_v55  ;;  %v3278_v6 = vsel %vm3238_vm6, %v2765_v15, %v540_v13  ;;  %v743_v27 = vshrl.u32 %v4080_v33, %v3169_v38 }
 0x106   :  { %4138 = vst [vmem:[#allocation15_spill] sm:$0xff] %v3272_v30  ;;  %vm675_vm9 = vcmp.lt.s32.totalorder %v3270_v46, 0  ;;  %v676_v26 = vsub.s32 0, %v3270_v46  ;;  %v780_v24 = vmul.u32 %v778_v22, %v776_v18  ;;  %v782_v62 = vmul.u32 %v778_v22, %v777_v44 }
 0x107   :  { %v781_v1 = vmul.u32 %v779_v40, %v776_v18  ;;  %v393_v8 = vmul.f32 %v392_v58, %v3209_v47  ;;  %v803_v43 = vmul.u32 %v801_v56, %v776_v18  ;;  %v804_v4 = vmul.u32 %v800_v53, %v777_v44 }
 0x108   :  { %v677_v31 = vsel %vm675_vm9, %v676_v26, %v3270_v46  ;;  %v783_v14 = vmul.u32 %v779_v40, %v777_v44  ;;  %v786_v37 = vshll.u32 %v782_v62, 16  ;;  %v3287_v13 = vmul.f32 %v399_v10, %v3209_v47 }
 0x109   :  { %v678_v42 = vclz %v677_v31  ;;  %v784_v55 = vshll.u32 %v781_v1, 16  ;;  %v3291_v20 = vmul.f32 %v3278_v6, %v3278_v6  ;;  %v666_v38 = vadd.s32 %v3176_v0, %v3181_v63 }
 0x10a   :  { %v802_v22 = vmul.u32 %v800_v53, %v776_v18  ;;  %v763_v26 = vsel %vm759_vm3, %v743_v27, %v3199_v50  ;;  %v785_v31 = vshrl.u32 %v781_v1, 16  ;;  %v806_v10 = vshll.u32 %v803_v43, 16 }
 0x10b   :  { %v2623_v58 = vadd.s32 4294967294, %v678_v42  ;;  %vm788_vm10 = vc.u32 %v780_v24, %v784_v55  ;;  %v790_v40 = vadd.s32 %v784_v55, %v780_v24  ;;  %v808_v39 = vshll.u32 %v804_v4, 16 }
 0x10c   :  { %v789_v41 = vsel %vm788_vm10, 1, %v4084_v3  ;;  %v805_v33 = vmul.u32 %v801_v56, %v777_v44  ;;  %vm810_vm13 = vc.u32 %v802_v22, %v806_v10  ;;  %v812_v63 = vadd.s32 %v806_v10, %v802_v22 }
 0x10d   :  { %vm2624_vm11 = vcmp.lt.s32.totalorder %v2623_v58, 0  ;;  %v791_v35 = vadd.s32 %v789_v41, %v783_v14  ;;  %vm792_vm12 = vc.u32 %v790_v40, %v786_v37  ;;  %v764_v50 = vsel %vm762_vm4, %v3204_v48, 2102212464 }
 0x10e   :  { %v681_v61 = vsel %vm2624_vm11, 0, %v2623_v58  ;;  %v793_v0 = vsel %vm792_vm12, 1, %v4084_v3  ;;  %v787_v24 = vshrl.u32 %v782_v62, 16  ;;  %v807_v1 = vshrl.u32 %v803_v43, 16 }
 0x10f   :  { %v682_v18 = vsub.s32 32, %v681_v61  ;;  %v686_v53 = vsub.s32 4294967266, %v681_v61  ;;  %v795_v27 = vadd.s32 %v793_v0, %v791_v35  ;;  %v811_v42 = vsel %vm810_vm13, 1, %v4084_v3 }
 0x110   :  { %vm814_vm14 = vc.u32 %v812_v63, %v808_v39  ;;  %v813_v56 = vadd.s32 %v811_v42, %v805_v33  ;;  %v683_v55 = vshll.u32 %v3270_v46, %v681_v61  ;;  %v765_v37 = vsel %vm761_vm7, %v3201_v34, %v764_v50 }
 0x111   :  { %v684_v41 = vshrl.u32 %v666_v38, %v682_v18  ;;  %v687_v14 = vadd.s32 127, %v686_v53  ;;  %v796_v44 = vadd.s32 %v795_v27, %v785_v31  ;;  %v815_v22 = vsel %vm814_vm14, 1, %v4084_v3 }
 0x112   :  { %v885_v48 = vand.u32 2139095040, %v3026_v17  ;;  %vm253_vm15 = vcmp.lt.s32.totalorder %v3256_v59, 2  ;;  %v541_v35 = vsub.s32 4, %v3058_v57  ;;  %v809_v43 = vshrl.u32 %v804_v4, 16 }
 0x113   :  { %v688_v62 = vshll.u32 %v687_v14, 23  ;;  %v817_v38 = vadd.s32 %v815_v22, %v813_v56  ;;  %v685_v58 = vor.u32 %v684_v41, %v683_v55  ;;  %v3312_v40 = vadd.s32 %v796_v44, %v787_v24 }
 0x114   :  { %v3314_v33 = vadd.s32 %v812_v63, %v808_v39  ;;  %v886_v46 = vshrl.u32 %v885_v48, 23  ;;  %v553_v61 = vmul.f32 -0.00019511016, %v3291_v20  ;;  %v766_v31 = vsel %vm760_vm8, %v763_v26, %v765_v37  ;;  %v63_v37 = vpop.permute.xlu1 %62 }
 0x115   :  { %v689_v34 = vor.u32 4788187, %v688_v62  ;;  %v818_v10 = vadd.s32 %v817_v38, %v807_v1  ;;  %vm254_vm0 = vcmp.eq.s32.totalorder %v3256_v59, 0  ;;  %v4082_v0 = vxor.u32 2147483648, %v3272_v30 }
 0x116   :  { %v406_v4 = vadd.s32 3, %v3260_v52  ;;  %v2628_v18 = vadd.s32 4294967169, %v886_v46  ;;  %v394_v53 = vadd.f32 -0.4999988, %v393_v8  ;;  %v542_v39 = vsel %vm419_vm5, %v541_v35, %v3058_v57 }
 0x117   :  { %v690_v63 = vand.u32 2147483647, %v689_v34  ;;  %v819_v50 = vadd.s32 %v818_v10, %v809_v43  ;;  %v692_v27 = vcvt.s32.f32 %v685_v58  ;;  %v820_v24 = vmul.u32 %v3233_v11, %v766_v31 }
 0x118   :  { %vm822_vm1 = vc.u32 %v3312_v40, %v3314_v33  ;;  %v892_v7 = vadd.s32 1, %v2628_v18  ;;  %v4139_v26 = vxor.u32 2147483648, %v3250_v16  ;;  %v401_v42 = vadd.f32 -0.16666654, %v3287_v13  ;;  %v58_v13 = vpop.permute.xlu0 %57 }
 0x119   :  { %v554_v8 = vadd.f32 0.008332121, %v553_v61  ;;  %v823_v41 = vadd.s32 1, %v819_v50  ;;  %vm257_vm2 = vcmp.eq.s32.totalorder %v3256_v59, 2  ;;  %v3335_v57 = vsel %vm3238_vm6, 0, %v542_v39 }
 0x11a   :  { %v256_v1 = vsel %vm254_vm0, %v3272_v30, %v4139_v26  ;;  %v693_v14 = vmul.f32 %v692_v27, %v690_v63  ;;  %vm893_vm3 = vcmp.gt.s32.totalorder %v892_v7, 0  ;;  %v259_v11 = vsel %vm257_vm2, %v4082_v0, %v3250_v16  ;;  %v2675_v59 = vld [vmem:[%s4064_s0] ss:$0 sm:$0xff]  ;;  %s2709_s0 = smov [#allocation2]  }
 0x11b   :  { %v3340_v44 = vand.u32 3, %v406_v4  ;;  %v824_v56 = vsel %vm822_vm1, %v823_v41, %v819_v50  ;;  %v894_v55 = vsel %vm893_vm3, %v892_v7, 0  ;;  %v260_v22 = vsel %vm253_vm15, %v256_v1, %v259_v11  ;;  %s2599_s28 = sshll.u32 %s2709_s0, 4  ;;  %s2600_s28 = int_to_ptr.vmem [resolvable:$true] %s2599_s28 }
 0x11c   :  { %v395_v48 = vmul.f32 %v394_v53, %v3209_v47  ;;  %v825_v23 = vadd.s32 %v824_v56, %v820_v24  ;;  %v896_v35 = vand.u32 31, %v894_v55  ;;  %v402_v62 = vmul.f32 %v401_v42, %v3209_v47 }
 0x11d   :  { %v546_v43 = vmul.f32 -0.001358992, %v3291_v20  ;;  %v555_v38 = vmul.f32 %v554_v8, %v3291_v20  ;;  %v561_v58 = vadd.s32 3, %v3335_v57  ;;  %vm4116_vm4 = vweird.f32 %v2760_v12 }
 0x11e   :  { %v694_v46 = vxor.u32 2147483648, %v693_v14  ;;  %v826_v61 = vadd.s32 536870912, %v825_v23  ;;  %v4083_v34 = vand.u32 2147483647, %v3026_v17  ;;  %v3354_v31 = vmul.f32 %v2675_v59, %v58_v13 }
 0x11f   :  { %v3356_v10 = vmul.f32 %v2675_v59, %v63_v37  ;;  %vm574_vm5 = vcmp.lt.s32.totalorder %v2979_v54, 0  ;;  %v3359_v47 = vsub.s32 32, %v896_v35  ;;  %v3363_v4 = vsel %vm4116_vm4, nan, %v260_v22 }
 0x120   :  { %4141 = vst [vmem:[#allocation17_spill] sm:$0xff] %v3363_v4  ;;  %v3365_v18 = vadd.f32 1.0, %v395_v48  ;;  %v4143_v53 = vand.u32 2147483647, %v2979_v54  ;;  %v3373_v63 = vshrl.u32 %v826_v61, 30  ;;  %v403_v50 = vadd.f32 1.0, %v402_v62 }
 0x121   :  { %4140 = vst [vmem:[#allocation16_spill] sm:$0xff] %v3356_v10  ;;  %vm412_vm8 = vcmp.eq.s32.totalorder %v3340_v44, 2  ;;  %v547_v27 = vadd.f32 0.041655596, %v546_v43  ;;  %v556_v24 = vadd.f32 -0.16666654, %v555_v38  ;;  %v695_v26 = vsel %vm574_vm5, %v694_v46, %v693_v14 }
 0x122   :  { %4142 = vst [vmem:[#allocation18_spill] sm:$0xff] %v3365_v18  ;;  %vm3369_vm7 = vcmp.le.f32.partialorder %v4143_v53, 0.7853982  ;;  %v3376_v7 = vand.u32 3, %v561_v58  ;;  %v828_v1 = vshll.u32 %v3373_v63, 30  ;;  %v909_v14 = vshrl.u32 %v4131_v2, %v3359_v47 }
 0x123   :  { %v889_v42 = vand.u32 8388607, %v4083_v34  ;;  %v4146_v8 = vmov 683565275   ;;  %v4147_v11 = vmov 2475754826   ;;  %v911_v38 = vshll.u32 %v4131_v2, %v896_v35 }
 0x124   :  { %v899_v41 = vshll.u32 %v4146_v8, %v896_v35  ;;  %v900_v56 = vshrl.u32 %v4147_v11, %v3359_v47  ;;  %v902_v37 = vshll.u32 %v4147_v11, %v896_v35  ;;  %v4148_v13 = vmov 2131351028  }
 0x125   :  { %v903_v22 = vshrl.u32 %v4148_v13, %v3359_v47  ;;  %v4149_v48 = vmov 2102212464   ;;  %v829_v43 = vsub.s32 %v825_v23, %v828_v1  ;;  %v912_v58 = vshrl.u32 %v4132_v51, %v3359_v47 }
 0x126   :  { %v908_v62 = vshll.u32 %v4149_v48, %v896_v35  ;;  %v3396_v46 = vmul.f32 %v403_v50, %v3164_v32  ;;  %v3398_v61 = vshrl.u32 %v894_v55, 5  ;;  %v905_v59 = vshll.u32 %v4148_v13, %v896_v35 }
 0x127   :  { %v906_v53 = vshrl.u32 %v4149_v48, %v3359_v47  ;;  %vm830_vm6 = vcmp.lt.s32.totalorder %v829_v43, 0  ;;  %v831_v1 = vsub.s32 0, %v829_v43  ;;  %v890_v0 = vor.u32 8388608, %v889_v42 }
 0x128   :  { %4150 = vst [vmem:[#allocation19_spill] sm:$0xff] %v3396_v46  ;;  %v548_v34 = vmul.f32 %v547_v27, %v3291_v20  ;;  %v557_v3 = vmul.f32 %v556_v24, %v3291_v20  ;;  %v3409_v32 = vsel %vm3369_vm7, %v2979_v54, %v695_v26  ;;  %v3411_v55 = vor.u32 %v900_v56, %v899_v41 }
 0x129   :  { %v832_v35 = vsel %vm830_vm6, %v831_v1, %v829_v43  ;;  %v3413_v50 = vor.u32 %v903_v22, %v902_v37  ;;  %v910_v4 = vor.u32 %v909_v14, %v908_v62  ;;  %v913_v12 = vor.u32 %v912_v58, %v911_v38 }
 0x12a   :  { %v833_v23 = vclz %v832_v35  ;;  %v3415_v25 = vor.u32 %v906_v53, %v905_v59  ;;  %vm914_vm9 = vcmp.lt.s32.totalorder %v3398_v61, 1  ;;  %vm917_vm10 = vcmp.lt.s32.totalorder %v3398_v61, 4 }
 0x12b   :  { %v4151_v24 = vxor.u32 2147483648, %v3365_v18  ;;  %vm916_vm11 = vcmp.lt.s32.totalorder %v3398_v61, 3  ;;  %v3428_v42 = vshll.u32 %v890_v0, 8  ;;  %v549_v41 = vadd.f32 -0.4999988, %v548_v34 }
 0x12c   :  { %v3432_v56 = vmul.f32 %v3409_v32, %v3409_v32  ;;  %v2626_v37 = vadd.s32 4294967294, %v833_v23  ;;  %vm915_vm12 = vcmp.lt.s32.totalorder %v3398_v61, 2  ;;  %v558_v22 = vadd.f32 1.0, %v557_v3 }
 0x12d   :  { %v3425_v26 = vsel %vm412_vm8, %v4151_v24, %v3396_v46  ;;  %v922_v62 = vsel %vm914_vm9, %v3411_v55, %v3413_v50  ;;  %v923_v14 = vsel %vm917_vm10, %v910_v4, 920167782  ;;  %v927_v0 = vsel %vm917_vm10, %v913_v12, 1326507024 }
 0x12e   :  { %v821_v34 = vadd.s32 %v3314_v33, %v3312_v40  ;;  %vm2627_vm13 = vcmp.lt.s32.totalorder %v2626_v37, 0  ;;  %v924_v38 = vsel %vm916_vm11, %v3415_v25, %v923_v14  ;;  %v926_v3 = vsel %vm914_vm9, %v3413_v50, %v3415_v25 }
 0x12f   :  { %v836_v58 = vsel %vm2627_vm13, 0, %v2626_v37  ;;  %v925_v59 = vsel %vm915_vm12, %v922_v62, %v924_v38  ;;  %v928_v12 = vsel %vm916_vm11, %v910_v4, %v927_v0  ;;  %v931_v53 = vand.u32 65535, %v3428_v42 }
 0x130   :  { %v701_v40 = vmul.f32 -0.001358992, %v3432_v56  ;;  %v708_v33 = vmul.f32 -0.00019511016, %v3432_v56  ;;  %v837_v23 = vsub.s32 32, %v836_v58  ;;  %v932_v1 = vshrl.u32 %v3428_v42, 16 }
 0x131   :  { %v841_v35 = vsub.s32 4294967266, %v836_v58  ;;  %v929_v24 = vsel %vm915_vm12, %v926_v3, %v928_v12  ;;  %v955_v37 = vand.u32 65535, %v925_v59  ;;  %v956_v14 = vshrl.u32 %v925_v59, 16 }
 0x132   :  { %v838_v27 = vshll.u32 %v829_v43, %v836_v58  ;;  %v839_v62 = vshrl.u32 %v821_v34, %v837_v23  ;;  %v933_v38 = vand.u32 65535, %v929_v24  ;;  %v934_v60 = vshrl.u32 %v929_v24, 16 }
 0x133   :  { %v550_v4 = vmul.f32 %v549_v41, %v3291_v20  ;;  %v3464_v0 = vmul.f32 %v558_v22, %v3278_v6  ;;  %v842_v45 = vadd.s32 127, %v841_v35  ;;  %v958_v29 = vmul.u32 %v956_v14, %v931_v53 }
 0x134   :  { %v840_v36 = vor.u32 %v839_v62, %v838_v27  ;;  %v898_v28 = vshrl.u32 %v4146_v8, %v3359_v47  ;;  %v935_v30 = vmul.u32 %v933_v38, %v931_v53  ;;  %v936_v16 = vmul.u32 %v934_v60, %v931_v53 }
 0x135   :  { %v843_v3 = vshll.u32 %v842_v45, 23  ;;  %v937_v12 = vmul.u32 %v933_v38, %v932_v1  ;;  %v957_v59 = vmul.u32 %v955_v37, %v931_v53  ;;  %v959_v43 = vmul.u32 %v955_v37, %v932_v1 }
 0x136   :  { %v702_v34 = vadd.f32 0.041655596, %v701_v40  ;;  %v709_v58 = vadd.f32 0.008332121, %v708_v33  ;;  %v938_v23 = vmul.u32 %v934_v60, %v932_v1  ;;  %v939_v24 = vshll.u32 %v936_v16, 16 }
 0x137   :  { %v844_v20 = vor.u32 4788187, %v843_v3  ;;  %v941_v41 = vshll.u32 %v937_v12, 16  ;;  %v960_v6 = vmul.u32 %v956_v14, %v932_v1  ;;  %v961_v22 = vshll.u32 %v958_v29, 16 }
 0x138   :  { %v847_v35 = vcvt.s32.f32 %v840_v36  ;;  %vm943_vm14 = vc.u32 %v935_v30, %v939_v24  ;;  %v945_v27 = vadd.s32 %v939_v24, %v935_v30  ;;  %v963_v62 = vshll.u32 %v959_v43, 16 }
 0x139   :  { %vm409_vm15 = vcmp.eq.s32.totalorder %v3340_v44, 0  ;;  %v845_v47 = vand.u32 2147483647, %v844_v20  ;;  %v940_v49 = vshrl.u32 %v936_v16, 16  ;;  %v4152_v45 = vmov 0  }
 0x13a   :  { %v944_v38 = vsel %vm943_vm14, 1, %v4152_v45  ;;  %vm965_vm0 = vc.u32 %v957_v59, %v961_v22  ;;  %vm729_vm1 = vcmp.lt.s32.totalorder %v3021_v5, 0  ;;  %vm947_vm2 = vc.u32 %v945_v27, %v941_v41 }
 0x13b   :  { %v946_v53 = vadd.s32 %v944_v38, %v938_v23  ;;  %v966_v60 = vsel %vm965_vm0, 1, %v4152_v45  ;;  %v967_v40 = vadd.s32 %v961_v22, %v957_v59  ;;  %v848_v33 = vmul.f32 %v847_v35, %v845_v47 }
 0x13c   :  { %v919_v36 = vsel %vm917_vm10, %v3415_v25, 2102212464  ;;  %v948_v30 = vsel %vm947_vm2, 1, %v4152_v45  ;;  %v968_v1 = vadd.s32 %v966_v60, %v960_v6  ;;  %v942_v37 = vshrl.u32 %v937_v12, 16 }
 0x13d   :  { %v950_v16 = vadd.s32 %v948_v30, %v946_v53  ;;  %v962_v14 = vshrl.u32 %v958_v29, 16  ;;  %vm969_vm3 = vc.u32 %v967_v40, %v963_v62  ;;  %vm408_vm8 = vcmp.lt.s32.totalorder %v3340_v44, 2 }
 0x13e   :  { %v696_v3 = vsub.s32 4, %v3242_v9  ;;  %v703_v23 = vmul.f32 %v702_v34, %v3432_v56  ;;  %v4153_v59 = vand.u32 2147483647, %v3021_v5  ;;  %v970_v25 = vsel %vm969_vm3, 1, %v4152_v45 }
 0x13f   :  { %v1040_v20 = vand.u32 2139095040, %v3354_v31  ;;  %vm564_vm10 = vcmp.eq.s32.totalorder %v3376_v7, 0  ;;  %v918_v29 = vsel %vm914_vm9, %v898_v28, %v3411_v55  ;;  %v951_v12 = vadd.s32 %v950_v16, %v940_v49 }
 0x140   :  { %vm3481_vm6 = vcmp.le.f32.partialorder %v4153_v59, 0.7853982  ;;  %v964_v41 = vshrl.u32 %v959_v43, 16  ;;  %v972_v6 = vadd.s32 %v970_v25, %v968_v1  ;;  %v849_v34 = vxor.u32 2147483648, %v848_v33 }
 0x141   :  { %v920_v22 = vsel %vm916_vm11, %v3413_v50, %v919_v36  ;;  %v3494_v35 = vadd.s32 %v967_v40, %v963_v62  ;;  %v1041_v27 = vshrl.u32 %v1040_v20, 23  ;;  %v3496_v47 = vadd.f32 1.0, %v550_v4 }
 0x142   :  { %v710_v38 = vmul.f32 %v709_v58, %v3432_v56  ;;  %v3499_v53 = vadd.s32 %v951_v12, %v942_v37  ;;  %v973_v60 = vadd.s32 %v972_v6, %v962_v14  ;;  %vm4113_vm9 = vweird.f32 %v2771_v21 }
 0x143   :  { %vm563_vm13 = vcmp.lt.s32.totalorder %v3376_v7, 2  ;;  %v697_v28 = vsel %vm574_vm5, %v696_v3, %v3242_v9  ;;  %v851_v49 = vsub.s32 4, %v3373_v63  ;;  %v4102_v55 = vand.u32 2147483647, %v3354_v31 }
 0x144   :  { %v2631_v50 = vadd.s32 4294967169, %v1041_v27  ;;  %v4156_v4 = vxor.u32 2147483648, %v3396_v46  ;;  %v4100_v58 = vxor.u32 2147483648, %v3464_v0  ;;  %v921_v62 = vsel %vm915_vm12, %v918_v29, %v920_v22 }
 0x145   :  { %v974_v40 = vadd.s32 %v973_v60, %v964_v41  ;;  %v704_v36 = vadd.f32 -0.4999988, %v703_v23  ;;  %v850_v9 = vsel %vm729_vm1, %v849_v34, %v848_v33  ;;  %vm977_vm5 = vc.u32 %v3499_v53, %v3494_v35 }
 0x146   :  { %v411_v43 = vsel %vm409_vm15, %v3365_v18, %v4156_v4  ;;  %v1047_v30 = vadd.s32 1, %v2631_v50  ;;  %v4099_v1 = vxor.u32 2147483648, %v3496_v47  ;;  %v3523_v37 = vsel %vm3369_vm7, 0, %v697_v28 }
 0x147   :  { %v711_v16 = vadd.f32 -0.16666654, %v710_v38  ;;  %v978_v14 = vadd.s32 1, %v974_v40  ;;  %v852_v61 = vsel %vm729_vm1, %v851_v49, %v3373_v63  ;;  %v975_v3 = vmul.u32 %v3428_v42, %v921_v62 }
 0x148   :  { %v1044_v33 = vand.u32 8388607, %v4102_v55  ;;  %vm1048_vm11 = vcmp.gt.s32.totalorder %v1047_v30, 0  ;;  %v415_v23 = vsel %vm408_vm8, %v411_v43, %v3425_v26  ;;  %v3537_v39 = vsel %vm3481_vm6, %v3021_v5, %v850_v9 }
 0x149   :  { %v979_v59 = vsel %vm977_vm5, %v978_v14, %v974_v40  ;;  %v1049_v25 = vsel %vm1048_vm11, %v1047_v30, 0  ;;  %v566_v63 = vsel %vm564_vm10, %v3496_v47, %v4100_v58  ;;  %v705_v42 = vmul.f32 %v704_v36, %v3432_v56 }
 0x14a   :  { %v716_v20 = vadd.s32 3, %v3523_v37  ;;  %v980_v29 = vadd.s32 %v979_v59, %v975_v3  ;;  %vm567_vm7 = vcmp.eq.s32.totalorder %v3376_v7, 2  ;;  %v712_v44 = vmul.f32 %v711_v16, %v3432_v56 }
 0x14b   :  { %v3550_v26 = vsel %vm3481_vm6, 0, %v852_v61  ;;  %v1051_v12 = vand.u32 31, %v1049_v25  ;;  %v569_v41 = vsel %vm567_vm7, %v4099_v1, %v3464_v0  ;;  %v3557_v6 = vmul.f32 %v3537_v39, %v3537_v39 }
 0x14c   :  { %v981_v34 = vadd.s32 536870912, %v980_v29  ;;  %v1045_v22 = vor.u32 8388608, %v1044_v33  ;;  %v3561_v27 = vsel %vm4113_vm9, nan, %v415_v23  ;;  %v3565_v56 = vsel %vm563_vm13, %v566_v63, %v569_v41 }
 0x14d   :  { %4157 = vst [vmem:[#allocation20_spill] sm:$0xff] %v3561_v27  ;;  %v1052_v24 = vsub.s32 32, %v1051_v12  ;;  %v1195_v38 = vand.u32 2139095040, %v3356_v10  ;;  %v3568_v60 = vadd.f32 1.0, %v705_v42  ;;  %v3570_v28 = vand.u32 3, %v716_v20 }
 0x14e   :  { %v3573_v49 = vadd.s32 3, %v3550_v26  ;;  %v3575_v50 = vshrl.u32 %v981_v34, 30  ;;  %v713_v4 = vadd.f32 1.0, %v712_v44  ;;  %v4101_v7 = vand.u32 2147483647, %v3356_v10 }
 0x14f   :  { %v1055_v43 = vshrl.u32 %v4147_v11, %v1052_v24  ;;  %v1058_v62 = vshrl.u32 %v4148_v13, %v1052_v24  ;;  %v856_v40 = vmul.f32 -0.001358992, %v3557_v6  ;;  %v863_v36 = vmul.f32 -0.00019511016, %v3557_v6 }
 0x150   :  { %v983_v9 = vshll.u32 %v3575_v50, 30  ;;  %v3583_v30 = vshll.u32 %v1045_v22, 8  ;;  %v1054_v16 = vshll.u32 %v4146_v8, %v1051_v12  ;;  %v1057_v14 = vshll.u32 %v4147_v11, %v1051_v12 }
 0x151   :  { %v1064_v61 = vshrl.u32 %v4131_v2, %v1052_v24  ;;  %v1196_v3 = vshrl.u32 %v1195_v38, 23  ;;  %v1050_v23 = vshrl.u32 %v1049_v25, 5  ;;  %v1061_v59 = vshrl.u32 %v4149_v48, %v1052_v24 }
 0x152   :  { %v984_v33 = vsub.s32 %v980_v29, %v983_v9  ;;  %v1063_v63 = vshll.u32 %v4149_v48, %v1051_v12  ;;  %v1056_v42 = vor.u32 %v1055_v43, %v1054_v16  ;;  %v1059_v20 = vor.u32 %v1058_v62, %v1057_v14 }
 0x153   :  { %v1060_v44 = vshll.u32 %v4148_v13, %v1051_v12  ;;  %v1067_v41 = vshrl.u32 %v4132_v51, %v1052_v24  ;;  %v1066_v1 = vshll.u32 %v4131_v2, %v1051_v12  ;;  %v3594_v58 = vmul.f32 %v713_v4, %v3409_v32 }
 0x154   :  { %vm985_vm12 = vcmp.lt.s32.totalorder %v984_v33, 0  ;;  %v986_v34 = vsub.s32 0, %v984_v33  ;;  %v1065_v22 = vor.u32 %v1064_v61, %v1063_v63  ;;  %v976_v25 = vadd.s32 %v3494_v35, %v3499_v53 }
 0x155   :  { %v1086_v29 = vand.u32 65535, %v3583_v30  ;;  %v1087_v38 = vshrl.u32 %v3583_v30, 16  ;;  %v1062_v62 = vor.u32 %v1061_v59, %v1060_v44  ;;  %v1068_v9 = vor.u32 %v1067_v41, %v1066_v1 }
 0x156   :  { %v987_v43 = vsel %vm985_vm12, %v986_v34, %v984_v33  ;;  %v3602_v16 = vand.u32 8388607, %v4101_v7  ;;  %v3604_v14 = vadd.f32 0.041655596, %v856_v40  ;;  %vm1069_vm14 = vcmp.lt.s32.totalorder %v1050_v23, 1 }
 0x157   :  { %v988_v12 = vclz %v987_v43  ;;  %vm1072_vm15 = vcmp.lt.s32.totalorder %v1050_v23, 4  ;;  %v864_v32 = vadd.f32 0.008332121, %v863_v36  ;;  %v1077_v4 = vsel %vm1069_vm14, %v1056_v42, %v1059_v20 }
 0x158   :  { %v1078_v61 = vsel %vm1072_vm15, %v1065_v22, 920167782  ;;  %v2634_v35 = vadd.s32 4294967169, %v1196_v3  ;;  %v1053_v63 = vshrl.u32 %v4146_v8, %v1052_v24  ;;  %vm1070_vm0 = vcmp.lt.s32.totalorder %v1050_v23, 2 }
 0x159   :  { %v2629_v53 = vadd.s32 4294967294, %v988_v12  ;;  %vm1071_vm1 = vcmp.lt.s32.totalorder %v1050_v23, 3  ;;  %v1074_v59 = vsel %vm1072_vm15, %v1062_v62, 2102212464  ;;  %v1081_v44 = vsel %vm1069_vm14, %v1059_v20, %v1062_v62 }
 0x15a   :  { %v1079_v1 = vsel %vm1071_vm1, %v1062_v62, %v1078_v61  ;;  %v1082_v41 = vsel %vm1072_vm15, %v1068_v9, 1326507024  ;;  %v1073_v34 = vsel %vm1069_vm14, %v1053_v63, %v1056_v42  ;;  %v1075_v27 = vsel %vm1071_vm1, %v1059_v20, %v1074_v59 }
 0x15b   :  { %vm2630_vm2 = vcmp.lt.s32.totalorder %v2629_v53, 0  ;;  %v1080_v40 = vsel %vm1070_vm0, %v1077_v4, %v1079_v1  ;;  %v1083_v43 = vsel %vm1071_vm1, %v1065_v22, %v1082_v41  ;;  %v865_v21 = vmul.f32 %v864_v32, %v3557_v6 }
 0x15c   :  { %v991_v7 = vsel %vm2630_vm2, 0, %v2629_v53  ;;  %v1084_v36 = vsel %vm1070_vm0, %v1081_v44, %v1083_v43  ;;  %v1110_v55 = vand.u32 65535, %v1080_v40  ;;  %v1111_v10 = vshrl.u32 %v1080_v40, 16 }
 0x15d   :  { %v992_v3 = vsub.s32 32, %v991_v7  ;;  %v996_v12 = vsub.s32 4294967266, %v991_v7  ;;  %v1088_v24 = vand.u32 65535, %v1084_v36  ;;  %v993_v18 = vshll.u32 %v984_v33, %v991_v7 }
 0x15e   :  { %v1089_v61 = vshrl.u32 %v1084_v36, 16  ;;  %v1113_v62 = vmul.u32 %v1111_v10, %v1086_v29  ;;  %v1114_v63 = vmul.u32 %v1110_v55, %v1087_v38  ;;  %v3611_v22 = vsel %vm1070_vm0, %v1073_v34, %v1075_v27 }
 0x15f   :  { %v994_v9 = vshrl.u32 %v976_v25, %v992_v3  ;;  %v997_v46 = vadd.s32 127, %v996_v12  ;;  %v1092_v42 = vmul.u32 %v1088_v24, %v1087_v38  ;;  %v1202_v1 = vadd.s32 1, %v2634_v35 }
 0x160   :  { %v1091_v4 = vmul.u32 %v1089_v61, %v1086_v29  ;;  %v1116_v53 = vshll.u32 %v1113_v62, 16  ;;  %v1090_v40 = vmul.u32 %v1088_v24, %v1086_v29  ;;  %v1112_v20 = vmul.u32 %v1110_v55, %v1086_v29 }
 0x161   :  { %v995_v44 = vor.u32 %v994_v9, %v993_v18  ;;  %v998_v41 = vshll.u32 %v997_v46, 23  ;;  %vm884_vm3 = vcmp.lt.s32.totalorder %v3026_v17, 0  ;;  %v1093_v32 = vmul.u32 %v1089_v61, %v1087_v38 }
 0x162   :  { %v1094_v7 = vshll.u32 %v1091_v4, 16  ;;  %v1096_v33 = vshll.u32 %v1092_v42, 16  ;;  %v1115_v59 = vmul.u32 %v1111_v10, %v1087_v38  ;;  %v4158_v25 = vand.u32 2147483647, %v3026_v17 }
 0x163   :  { %v999_v27 = vor.u32 4788187, %v998_v41  ;;  %v1002_v23 = vcvt.s32.f32 %v995_v44  ;;  %v1118_v34 = vshll.u32 %v1114_v63, 16  ;;  %vm1120_vm6 = vc.u32 %v1112_v20, %v1116_v53 }
 0x164   :  { %vm3616_vm8 = vcmp.le.f32.partialorder %v4158_v25, 0.7853982  ;;  %vm1098_vm10 = vc.u32 %v1090_v40, %v1094_v7  ;;  %v1100_v18 = vadd.s32 %v1094_v7, %v1090_v40  ;;  %v1121_v46 = vsel %vm1120_vm6, 1, %v4152_v45 }
 0x165   :  { %v1122_v55 = vadd.s32 %v1116_v53, %v1112_v20  ;;  %v1000_v29 = vand.u32 2147483647, %v999_v27  ;;  %v1099_v35 = vsel %vm1098_vm10, 1, %v4152_v45  ;;  %v1123_v36 = vadd.s32 %v1121_v46, %v1115_v59 }
 0x166   :  { %vm1203_vm13 = vcmp.gt.s32.totalorder %v1202_v1, 0  ;;  %v1095_v10 = vshrl.u32 %v1091_v4, 16  ;;  %v1101_v38 = vadd.s32 %v1099_v35, %v1093_v32  ;;  %vm1102_vm5 = vc.u32 %v1100_v18, %v1096_v33 }
 0x167   :  { %vm1124_vm11 = vc.u32 %v1122_v55, %v1118_v34  ;;  %v1003_v3 = vmul.f32 %v1002_v23, %v1000_v29  ;;  %v1103_v12 = vsel %vm1102_vm5, 1, %v4152_v45  ;;  %v1204_v61 = vsel %vm1203_vm13, %v1202_v1, 0 }
 0x168   :  { %v1125_v24 = vsel %vm1124_vm11, 1, %v4152_v45  ;;  %v1105_v9 = vadd.s32 %v1103_v12, %v1101_v38  ;;  %v1117_v44 = vshrl.u32 %v1113_v62, 16  ;;  %v1206_v40 = vand.u32 31, %v1204_v61 }
 0x169   :  { %v1127_v41 = vadd.s32 %v1125_v24, %v1123_v36  ;;  %v858_v53 = vmul.f32 %v3604_v14, %v3557_v6  ;;  %v866_v20 = vadd.f32 -0.16666654, %v865_v21  ;;  %v1004_v7 = vxor.u32 2147483648, %v1003_v3 }
 0x16a   :  { %v1097_v59 = vshrl.u32 %v1092_v42, 16  ;;  %v1106_v4 = vadd.s32 %v1105_v9, %v1095_v10  ;;  %v1119_v32 = vshrl.u32 %v1114_v63, 16  ;;  %v3626_v25 = vsub.s32 32, %v1206_v40 }
 0x16b   :  { %v1128_v33 = vadd.s32 %v1127_v41, %v1117_v44  ;;  %v1005_v27 = vsel %vm884_vm3, %v1004_v7, %v1003_v3  ;;  %v3630_v23 = vadd.s32 %v1122_v55, %v1118_v34  ;;  %v1130_v62 = vmul.u32 %v3583_v30, %v3611_v22 }
 0x16c   :  { %v1209_v1 = vshll.u32 %v4146_v8, %v1206_v40  ;;  %v3638_v21 = vsel %vm3616_vm8, %v3026_v17, %v1005_v27  ;;  %v3640_v14 = vadd.s32 %v1106_v4, %v1097_v59  ;;  %v1212_v63 = vshll.u32 %v4147_v11, %v1206_v40 }
 0x16d   :  { %v1129_v42 = vadd.s32 %v1128_v33, %v1119_v32  ;;  %v3645_v18 = vmul.f32 %v3638_v21, %v3638_v21  ;;  %v1210_v34 = vshrl.u32 %v4147_v11, %v3626_v25  ;;  %v1213_v30 = vshrl.u32 %v4148_v13, %v3626_v25 }
 0x16e   :  { %v1218_v22 = vshll.u32 %v4149_v48, %v1206_v40  ;;  %vm1132_vm7 = vc.u32 %v3640_v14, %v3630_v23  ;;  %v1216_v55 = vshrl.u32 %v4149_v48, %v3626_v25  ;;  %v1219_v29 = vshrl.u32 %v4131_v2, %v3626_v25 }
 0x16f   :  { %v1133_v46 = vadd.s32 1, %v1129_v42  ;;  %v1011_v35 = vmul.f32 -0.001358992, %v3645_v18  ;;  %v1018_v36 = vmul.f32 -0.00019511016, %v3645_v18  ;;  %v3660_v11 = vshrl.u32 %v1204_v61, 5 }
 0x170   :  { %v1215_v10 = vshll.u32 %v4148_v13, %v1206_v40  ;;  %v3663_v3 = vor.u32 %v1210_v34, %v1209_v1  ;;  %v3665_v12 = vor.u32 %v1213_v30, %v1212_v63  ;;  %v1220_v24 = vor.u32 %v1219_v29, %v1218_v22 }
 0x171   :  { %v1134_v38 = vsel %vm1132_vm7, %v1133_v46, %v1129_v42  ;;  %vm719_vm12 = vcmp.eq.s32.totalorder %v3570_v28, 0  ;;  %vm722_vm14 = vcmp.eq.s32.totalorder %v3570_v28, 2  ;;  %v1019_v48 = vadd.f32 0.008332121, %v1018_v36 }
 0x172   :  { %v1135_v9 = vadd.s32 %v1134_v38, %v1130_v62  ;;  %v1221_v44 = vshll.u32 %v4131_v2, %v1206_v40  ;;  %v1222_v61 = vshrl.u32 %v4132_v51, %v3626_v25  ;;  %v4111_v41 = vxor.u32 2147483648, %v3568_v60 }
 0x173   :  { %v859_v13 = vadd.f32 -0.4999988, %v858_v53  ;;  %v1200_v7 = vor.u32 8388608, %v3602_v16  ;;  %v1217_v59 = vor.u32 %v1216_v55, %v1215_v10  ;;  %v867_v4 = vmul.f32 %v866_v20, %v3557_v6 }
 0x174   :  { %v1136_v32 = vadd.s32 536870912, %v1135_v9  ;;  %v1223_v33 = vor.u32 %v1222_v61, %v1221_v44  ;;  %vm1227_vm15 = vcmp.lt.s32.totalorder %v3660_v11, 4  ;;  %v1006_v27 = vsub.s32 4, %v3575_v50 }
 0x175   :  { %v1012_v62 = vadd.f32 0.041655596, %v1011_v35  ;;  %vm1224_vm0 = vcmp.lt.s32.totalorder %v3660_v11, 1  ;;  %v1233_v2 = vsel %vm1227_vm15, %v1220_v24, 920167782  ;;  %v1020_v51 = vmul.f32 %v1019_v48, %v3645_v18 }
 0x176   :  { %v3681_v40 = vshrl.u32 %v1136_v32, 30  ;;  %vm1226_vm1 = vcmp.lt.s32.totalorder %v3660_v11, 3  ;;  %v1232_v16 = vsel %vm1224_vm0, %v3663_v3, %v3665_v12  ;;  %v4110_v53 = vxor.u32 2147483648, %v3594_v58 }
 0x177   :  { %v860_v20 = vmul.f32 %v859_v13, %v3557_v6  ;;  %v1234_v1 = vsel %vm1226_vm1, %v1217_v59, %v1233_v2  ;;  %v1237_v42 = vsel %vm1227_vm15, %v1223_v33, 1326507024  ;;  %v868_v63 = vadd.f32 1.0, %v867_v4 }
 0x178   :  { %v1138_v34 = vshll.u32 %v3681_v40, 30  ;;  %vm1225_vm2 = vcmp.lt.s32.totalorder %v3660_v11, 2  ;;  %v1236_v30 = vsel %vm1224_vm0, %v3665_v12, %v1217_v59  ;;  %v3700_v22 = vand.u32 3, %v3573_v49 }
 0x179   :  { %v1235_v6 = vsel %vm1225_vm2, %v1232_v16, %v1234_v1  ;;  %v1238_v46 = vsel %vm1226_vm1, %v1220_v24, %v1237_v42  ;;  %v3706_v55 = vshll.u32 %v1200_v7, 8  ;;  %v1007_v29 = vsel %vm884_vm3, %v1006_v27, %v3575_v50 }
 0x17a   :  { %v1013_v35 = vmul.f32 %v1012_v62, %v3645_v18  ;;  %v1021_v36 = vadd.f32 -0.16666654, %v1020_v51  ;;  %v3712_v10 = vsub.s32 %v1135_v9, %v1138_v34  ;;  %v3719_v49 = vsel %vm719_vm12, %v3568_v60, %v4110_v53 }
 0x17b   :  { %v3726_v38 = vsel %vm722_vm14, %v4111_v41, %v3594_v58  ;;  %v3728_v50 = vadd.f32 1.0, %v860_v20  ;;  %v1239_v24 = vsel %vm1225_vm2, %v1236_v30, %v1238_v46  ;;  %v3733_v48 = vmul.f32 %v868_v63, %v3537_v39 }
 0x17c   :  { %vm1140_vm3 = vcmp.lt.s32.totalorder %v3712_v10, 0  ;;  %v1141_v9 = vsub.s32 0, %v3712_v10  ;;  %v1266_v44 = vshrl.u32 %v1235_v6, 16  ;;  %v3739_v61 = vsel %vm3616_vm8, 0, %v1007_v29 }
 0x17d   :  { %v1241_v13 = vand.u32 65535, %v3706_v55  ;;  %v1243_v7 = vand.u32 65535, %v1239_v24  ;;  %v1244_v4 = vshrl.u32 %v1239_v24, 16  ;;  %v1014_v32 = vadd.f32 -0.4999988, %v1013_v35 }
 0x17e   :  { %v1022_v33 = vmul.f32 %v1021_v36, %v3645_v18  ;;  %v1142_v27 = vsel %vm1140_vm3, %v1141_v9, %v3712_v10  ;;  %v1242_v39 = vshrl.u32 %v3706_v55, 16  ;;  %v1265_v16 = vand.u32 65535, %v1235_v6 }
 0x17f   :  { %v1143_v2 = vclz %v1142_v27  ;;  %v1246_v51 = vmul.u32 %v1244_v4, %v1241_v13  ;;  %v875_v43 = vxor.u32 2147483648, %v3733_v48  ;;  %v1026_v20 = vadd.s32 3, %v3739_v61 }
 0x180   :  { %v1247_v1 = vmul.u32 %v1243_v7, %v1242_v39  ;;  %v3748_v42 = vmul.u32 %v1266_v44, %v1241_v13  ;;  %v1131_v63 = vadd.s32 %v3630_v23, %v3640_v14  ;;  %v1208_v30 = vshrl.u32 %v4146_v8, %v3626_v25 }
 0x181   :  { %v2632_v34 = vadd.s32 4294967294, %v1143_v2  ;;  %v1229_v46 = vsel %vm1227_vm15, %v1217_v59, 2102212464  ;;  %v1015_v29 = vmul.f32 %v1014_v32, %v3645_v18  ;;  %v1023_v6 = vadd.f32 1.0, %v1022_v33 }
 0x182   :  { %v1245_v35 = vmul.u32 %v1243_v7, %v1241_v13  ;;  %v1249_v36 = vshll.u32 %v1246_v51, 16  ;;  %v1248_v24 = vmul.u32 %v1244_v4, %v1242_v39  ;;  %v1251_v9 = vshll.u32 %v1247_v1, 16 }
 0x183   :  { %vm2633_vm8 = vcmp.lt.s32.totalorder %v2632_v34, 0  ;;  %v1269_v27 = vmul.u32 %v1265_v16, %v1242_v39  ;;  %v1271_v23 = vshll.u32 %v3748_v42, 16  ;;  %vm1039_vm10 = vcmp.lt.s32.totalorder %v3354_v31, 0 }
 0x184   :  { %v1146_v53 = vsel %vm2633_vm8, 0, %v2632_v34  ;;  %vm1253_vm6 = vc.u32 %v1245_v35, %v1249_v36  ;;  %v1255_v41 = vadd.s32 %v1249_v36, %v1245_v35  ;;  %v1267_v59 = vmul.u32 %v1265_v16, %v1241_v13 }
 0x185   :  { %v1147_v8 = vsub.s32 32, %v1146_v53  ;;  %v1151_v25 = vsub.s32 4294967266, %v1146_v53  ;;  %v1254_v14 = vsel %vm1253_vm6, 1, %v4152_v45  ;;  %vm874_vm13 = vcmp.eq.s32.totalorder %v3700_v22, 0 }
 0x186   :  { %v1250_v18 = vshrl.u32 %v1246_v51, 16  ;;  %v1256_v7 = vadd.s32 %v1254_v14, %v1248_v24  ;;  %vm1257_vm5 = vc.u32 %v1255_v41, %v1251_v9  ;;  %v1270_v4 = vmul.u32 %v1266_v44, %v1242_v39 }
 0x187   :  { %vm877_vm11 = vcmp.eq.s32.totalorder %v3700_v22, 2  ;;  %v1148_v32 = vshll.u32 %v3712_v10, %v1146_v53  ;;  %v1149_v33 = vshrl.u32 %v1131_v63, %v1147_v8  ;;  %v1152_v2 = vadd.s32 127, %v1151_v25 }
 0x188   :  { %v1258_v34 = vsel %vm1257_vm5, 1, %v4152_v45  ;;  %v1273_v36 = vshll.u32 %v1269_v27, 16  ;;  %vm1275_vm7 = vc.u32 %v1267_v59, %v1271_v23  ;;  %v1277_v62 = vadd.s32 %v1271_v23, %v1267_v59 }
 0x189   :  { %v1260_v35 = vadd.s32 %v1258_v34, %v1256_v7  ;;  %vm718_vm12 = vcmp.lt.s32.totalorder %v3570_v28, 2  ;;  %vm873_vm14 = vcmp.lt.s32.totalorder %v3700_v22, 2  ;;  %v1150_v13 = vor.u32 %v1149_v33, %v1148_v32 }
 0x18a   :  { %v1153_v51 = vshll.u32 %v1152_v2, 23  ;;  %v1161_v41 = vsub.s32 4, %v3681_v40  ;;  %v1276_v44 = vsel %vm1275_vm7, 1, %v4152_v45  ;;  %v3769_v53 = vmul.f32 %v1023_v6, %v3638_v21 }
 0x18b   :  { %v1261_v10 = vadd.s32 %v1260_v35, %v1250_v18  ;;  %v1278_v39 = vadd.s32 %v1276_v44, %v1270_v4  ;;  %vm1279_vm15 = vc.u32 %v1277_v62, %v1273_v36  ;;  %v1027_v16 = vand.u32 3, %v1026_v20 }
 0x18c   :  { %v1154_v63 = vor.u32 4788187, %v1153_v51  ;;  %v1252_v24 = vshrl.u32 %v1247_v1, 16  ;;  %v1280_v9 = vsel %vm1279_vm15, 1, %v4152_v45  ;;  %v3772_v23 = vadd.f32 1.0, %v1015_v29 }
 0x18d   :  { %v1228_v8 = vsel %vm1224_vm0, %v1208_v30, %v3663_v3  ;;  %v1272_v25 = vshrl.u32 %v3748_v42, 16  ;;  %v1282_v14 = vadd.s32 %v1280_v9, %v1278_v39  ;;  %vm4115_vm3 = vweird.f32 %v2765_v15 }
 0x18e   :  { %vm4112_vm8 = vweird.f32 %v2979_v54  ;;  %v1155_v21 = vand.u32 2147483647, %v1154_v63  ;;  %v1157_v6 = vcvt.s32.f32 %v1150_v13  ;;  %v1230_v20 = vsel %vm1226_vm1, %v3665_v12, %v1229_v46 }
 0x18f   :  { %v1262_v45 = vadd.s32 %v1261_v10, %v1252_v24  ;;  %v1030_v1 = vxor.u32 2147483648, %v3769_v53  ;;  %v1162_v3 = vsel %vm1039_vm10, %v1161_v41, %v3681_v40  ;;  %v1274_v30 = vshrl.u32 %v1269_v27, 16 }
 0x190   :  { %v1283_v42 = vadd.s32 %v1282_v14, %v1272_v25  ;;  %v876_v29 = vsel %vm874_vm13, %v3728_v50, %v875_v43  ;;  %v4161_v59 = vand.u32 2147483647, %v3354_v31  ;;  %v1158_v12 = vmul.f32 %v1157_v6, %v1155_v21 }
 0x191   :  { %v1281_v46 = vadd.s32 %v1277_v62, %v1273_v36  ;;  %v4164_v7 = vxor.u32 2147483648, %v3728_v50  ;;  %v1033_v27 = vxor.u32 2147483648, %v3772_v23  ;;  %v1231_v4 = vsel %vm1225_vm2, %v1228_v8, %v1230_v20 }
 0x192   :  { %vm3794_vm0 = vcmp.le.f32.partialorder %v4161_v59, 0.7853982  ;;  %v1284_v32 = vadd.s32 %v1283_v42, %v1274_v30  ;;  %vm1029_vm1 = vcmp.eq.s32.totalorder %v1027_v16, 0  ;;  %v1159_v33 = vxor.u32 2147483648, %v1158_v12 }
 0x193   :  { %v879_v40 = vsel %vm877_vm11, %v4164_v7, %v3733_v48  ;;  %v3808_v2 = vsel %vm3794_vm0, 0, %v1162_v3  ;;  %vm1287_vm6 = vc.u32 %v1262_v45, %v1281_v46  ;;  %v725_v62 = vsel %vm718_vm12, %v3719_v49, %v3726_v38 }
 0x194   :  { %v880_v34 = vsel %vm873_vm14, %v876_v29, %v879_v40  ;;  %v1031_v11 = vsel %vm1029_vm1, %v3772_v23, %v1030_v1  ;;  %v1288_v35 = vadd.s32 1, %v1284_v32  ;;  %vm1028_vm2 = vcmp.lt.s32.totalorder %v1027_v16, 2 }
 0x195   :  { %vm1032_vm13 = vcmp.eq.s32.totalorder %v1027_v16, 2  ;;  %v1160_v36 = vsel %vm1039_vm10, %v1159_v33, %v1158_v12  ;;  %v1285_v13 = vmul.u32 %v3706_v55, %v1231_v4  ;;  %v1181_v49 = vadd.s32 3, %v3808_v2 }
 0x196   :  { %v1034_v28 = vsel %vm1032_vm13, %v1033_v27, %v3769_v53  ;;  %v3828_v22 = vsel %vm3794_vm0, %v3354_v31, %v1160_v36  ;;  %v1289_v38 = vsel %vm1287_vm6, %v1288_v35, %v1284_v32  ;;  %v3834_v10 = vand.u32 3, %v3073_v19  ;;  %v4171_v32 = vld [vmem:[#allocation15_spill] sm:$0xff] }
 0x197   :  { %v1035_v51 = vsel %vm1028_vm2, %v1031_v11, %v1034_v28  ;;  %v1165_v41 = vmul.f32 %v3828_v22, %v3828_v22  ;;  %v1290_v44 = vadd.s32 %v1289_v38, %v1285_v13  ;;  %v3839_v55 = vsel %vm4115_vm3, nan, %v3565_v56 }
 0x198   :  { %v3843_v39 = vsel %vm4112_vm8, nan, %v725_v62  ;;  %vm4117_vm10 = vweird.f32 %v3021_v5  ;;  %vm4114_vm5 = vweird.f32 %v3026_v17  ;;  %v3855_v56 = vand.u32 3, %v1181_v49 }
 0x199   :  { %v3849_v16 = vsel %vm4117_vm10, nan, %v880_v34  ;;  %v1166_v63 = vmul.f32 -0.001358992, %v1165_v41  ;;  %v1173_v19 = vmul.f32 -0.00019511016, %v1165_v41  ;;  %v1291_v24 = vadd.s32 536870912, %v1290_v44 }
 0x19a   :  { %v3853_v9 = vsel %vm4114_vm5, nan, %v1035_v51  ;;  %v1799_v8 = vand.u32 3, %v3335_v57  ;;  %v2107_v25 = vand.u32 3, %v3550_v26  ;;  %vm1492_vm11 = vcmp.lt.s32.totalorder %v3834_v10, 2 }
 0x19b   :  { %v1167_v14 = vadd.f32 0.041655596, %v1166_v63  ;;  %v1174_v21 = vadd.f32 0.008332121, %v1173_v19  ;;  %v3859_v6 = vshrl.u32 %v1291_v24, 30  ;;  %vm1493_vm7 = vcmp.eq.s32.totalorder %v3834_v10, 0 }
 0x19c   :  { %vm1496_vm12 = vcmp.eq.s32.totalorder %v3834_v10, 2  ;;  %v3865_v20 = vand.u32 3, %v3260_v52  ;;  %v3868_v3 = vand.u32 3, %v3523_v37  ;;  %v3871_v57 = vand.u32 3, %v3739_v61  ;;  %v4183_v19 = vld [vmem:[#allocation9_spill] sm:$0xff] }
 0x19d   :  { %v1168_v26 = vmul.f32 %v1167_v14, %v1165_v41  ;;  %v1175_v30 = vmul.f32 %v1174_v21, %v1165_v41  ;;  %v3873_v42 = vadd.s32 %v1281_v46, %v1262_v45  ;;  %v1293_v29 = vshll.u32 %v3859_v6, 30  ;;  %v4165_v46 = vld [vmem:[#allocation11_spill] sm:$0xff] }
 0x19e   :  { %vm1800_vm14 = vcmp.lt.s32.totalorder %v1799_v8, 2  ;;  %vm1801_vm15 = vcmp.eq.s32.totalorder %v1799_v8, 0  ;;  %vm1804_vm0 = vcmp.eq.s32.totalorder %v1799_v8, 2  ;;  %vm2108_vm1 = vcmp.lt.s32.totalorder %v2107_v25, 2 }
 0x19f   :  { %v1169_v59 = vadd.f32 -0.4999988, %v1168_v26  ;;  %v1176_v18 = vadd.f32 -0.16666654, %v1175_v30  ;;  %v3876_v52 = vsub.s32 %v1290_v44, %v1293_v29  ;;  %vm2109_vm6 = vcmp.eq.s32.totalorder %v2107_v25, 0 }
 0x1a0   :  { %vm1184_vm2 = vcmp.eq.s32.totalorder %v3855_v56, 0  ;;  %v2111_v37 = vsel %vm2109_vm6, %v3728_v50, %v875_v43  ;;  %vm2112_vm9 = vcmp.eq.s32.totalorder %v2107_v25, 2  ;;  %vm2262_vm5 = vcmp.lt.s32.totalorder %v3871_v57, 2  ;;  %v4169_v43 = vld [vmem:[#allocation14_spill] sm:$0xff] }
 0x1a1   :  { %vm2263_vm3 = vcmp.eq.s32.totalorder %v3871_v57, 0  ;;  %v1170_v61 = vmul.f32 %v1169_v59, %v1165_v41  ;;  %v1177_v45 = vmul.f32 %v1176_v18, %v1165_v41  ;;  %vm1295_vm10 = vcmp.lt.s32.totalorder %v3876_v52, 0  ;;  %v4175_v41 = vld [vmem:[#allocation7_spill] sm:$0xff]  ;;  %v4188_v18 = vld [vmem:[#allocation10_spill] sm:$0xff] }
 0x1a2   :  { %v1296_v12 = vsub.s32 0, %v3876_v52  ;;  %v4166_v7 = vand.u32 1, %v4165_v46  ;;  %v4170_v4 = vxor.u32 2147483648, %v4169_v43  ;;  %v4172_v62 = vxor.u32 2147483648, %v3464_v0 }
 0x1a3   :  { %v4173_v11 = vxor.u32 2147483648, %v3728_v50  ;;  %v2415_v36 = vand.u32 3, %v3808_v2  ;;  %v1171_v13 = vadd.f32 1.0, %v1170_v61  ;;  %v1178_v28 = vadd.f32 1.0, %v1177_v45 }
 0x1a4   :  { %vm3892_vm8 = vcmp.eq.s32.totalorder %v4166_v7, 0  ;;  %v1495_v33 = vsel %vm1493_vm7, %v4171_v32, %v4170_v4  ;;  %v1803_v34 = vsel %vm1801_vm15, %v3496_v47, %v4172_v62  ;;  %v1297_v49 = vsel %vm1295_vm10, %v1296_v12, %v3876_v52 }
 0x1a5   :  { %v2114_v35 = vsel %vm2112_vm9, %v4173_v11, %v3733_v48  ;;  %v4174_v38 = vxor.u32 2147483648, %v4171_v32  ;;  %v4176_v44 = vand.u32 1, %v4175_v41  ;;  %v4179_v48 = vld [vmem:[#allocation8_spill] sm:$0xff]  ;;  %v4184_v24 = vand.u32 1, %v4183_v19 }
 0x1a6   :  { %v4180_v2 = vand.u32 1, %v4179_v48  ;;  %v1298_v21 = vclz %v1297_v49  ;;  %v4187_v30 = vxor.u32 2147483648, %v3496_v47  ;;  %v2115_v59 = vsel %vm2108_vm1, %v2111_v37, %v2114_v35 }
 0x1a7   :  { %v1498_v51 = vsel %vm1496_vm12, %v4174_v38, %v4169_v43  ;;  %vm3921_vm13 = vcmp.eq.s32.totalorder %v4176_v44, 0  ;;  %vm3933_vm10 = vcmp.eq.s32.totalorder %v4184_v24, 0  ;;  %v4189_v61 = vand.u32 1, %v4188_v18 }
 0x1a8   :  { %vm3927_vm9 = vcmp.eq.s32.totalorder %v4180_v2, 0  ;;  %v1499_v26 = vsel %vm1492_vm11, %v1495_v33, %v1498_v51  ;;  %v1806_v29 = vsel %vm1804_vm0, %v4187_v30, %v3464_v0  ;;  %v1179_v12 = vmul.f32 %v1178_v28, %v3828_v22  ;;  %v4192_v0 = vld [vmem:[#allocation12_spill] sm:$0xff]  ;;  %v4196_v22 = vld [vmem:[#allocation13_spill] sm:$0xff] }
 0x1a9   :  { %vm3947_vm15 = vcmp.eq.s32.totalorder %v4189_v61, 0  ;;  %v1188_v46 = vxor.u32 2147483648, %v1171_v13  ;;  %v1807_v7 = vsel %vm1800_vm14, %v1803_v34, %v1806_v29  ;;  %v2265_v47 = vsel %vm2263_vm3, %v3772_v23, %v1030_v1  ;;  %v4201_v33 = vld [vmem:[#allocation5_spill] sm:$0xff]  ;;  %v4205_v23 = vld [vmem:[#allocation19_spill] sm:$0xff] }
 0x1aa   :  { %v4193_v10 = vand.u32 1, %v4192_v0  ;;  %v2635_v37 = vadd.s32 4294967294, %v1298_v21  ;;  %vm2266_vm0 = vcmp.eq.s32.totalorder %v3871_v57, 2  ;;  %vm2417_vm12 = vcmp.eq.s32.totalorder %v2415_v36, 0 }
 0x1ab   :  { %v4197_v8 = vand.u32 1, %v4196_v22  ;;  %v1185_v4 = vxor.u32 2147483648, %v1179_v12  ;;  %vm4200_vm3 = vweird.f32 %v3021_v5  ;;  %v2268_v32 = vsel %vm2266_vm0, %v1033_v27, %v3769_v53  ;;  %v4206_v53 = vld [vmem:[#allocation18_spill] sm:$0xff] }
 0x1ac   :  { %vm3960_vm11 = vcmp.eq.s32.totalorder %v4193_v10, 0  ;;  %v2116_v1 = vsel %vm4200_vm3, nan, %v2115_v59  ;;  %vm2420_vm7 = vcmp.eq.s32.totalorder %v2415_v36, 2  ;;  %vm2636_vm6 = vcmp.lt.s32.totalorder %v2635_v37, 0  ;;  %v4225_v10 = vld [vmem:[#allocation20_spill] sm:$0xff] }
 0x1ad   :  { %vm3967_vm14 = vcmp.eq.s32.totalorder %v4197_v8, 0  ;;  %vm4202_vm4 = vweird.f32 %v4201_v33  ;;  %vm4203_vm1 = vweird.f32 %v2765_v15  ;;  %v2269_v11 = vsel %vm2262_vm5, %v2265_v47, %v2268_v32  ;;  %v4224_v47 = vld [vmem:[#allocation17_spill] sm:$0xff] }
 0x1ae   :  { %v1500_v62 = vsel %vm4202_vm4, nan, %v1499_v26  ;;  %v1808_v34 = vsel %vm4203_vm1, nan, %v1807_v7  ;;  %v1186_v35 = vsel %vm1184_vm2, %v1171_v13, %v1185_v4  ;;  %vm4204_vm3 = vcmp.eq.s32.totalorder %v3855_v56, 2 }
 0x1af   :  { %v1189_v5 = vsel %vm4204_vm3, %v1188_v46, %v1179_v12  ;;  %v1301_v28 = vsel %vm2636_vm6, 0, %v2635_v37  ;;  %v4207_v27 = vxor.u32 2147483648, %v4206_v53  ;;  %vm4208_vm0 = vcmp.eq.s32.totalorder %v3865_v20, 2 }
 0x1b0   :  { %vm4209_vm4 = vcmp.lt.s32.totalorder %v3855_v56, 2  ;;  %v1302_v38 = vsub.s32 32, %v1301_v28  ;;  %v1306_v51 = vsub.s32 4294967266, %v1301_v28  ;;  %v4210_v57 = vxor.u32 2147483648, %v3568_v60 }
 0x1b1   :  { %v1652_v49 = vsel %vm4208_vm0, %v4207_v27, %v4205_v23  ;;  %v1190_v15 = vsel %vm4209_vm4, %v1186_v35, %v1189_v5  ;;  %vm4211_vm5 = vcmp.eq.s32.totalorder %v3868_v3, 2  ;;  %v1303_v48 = vshll.u32 %v3876_v52, %v1301_v28 }
 0x1b2   :  { %v1960_v44 = vsel %vm4211_vm5, %v4210_v57, %v3594_v58  ;;  %v4212_v2 = vxor.u32 2147483648, %v4205_v23  ;;  %vm4213_vm2 = vcmp.eq.s32.totalorder %v3865_v20, 0  ;;  %v4214_v24 = vxor.u32 2147483648, %v3594_v58  ;;  %v4220_v58 = vld [vmem:[#allocation6_spill] sm:$0xff] }
 0x1b3   :  { %vm4215_vm6 = vcmp.eq.s32.totalorder %v3868_v3, 0  ;;  %vm4216_vm1 = vweird.f32 %v3026_v17  ;;  %v1304_v26 = vshrl.u32 %v3873_v42, %v1302_v38  ;;  %v1307_v30 = vadd.s32 127, %v1306_v51 }
 0x1b4   :  { %v1649_v19 = vsel %vm4213_vm2, %v4206_v53, %v4212_v2  ;;  %v1957_v56 = vsel %vm4215_vm6, %v3568_v60, %v4214_v24  ;;  %v2270_v21 = vsel %vm4216_vm1, nan, %v2269_v11  ;;  %vm4217_vm3 = vcmp.lt.s32.totalorder %v3865_v20, 2 }
 0x1b5   :  { %v1653_v52 = vsel %vm4217_vm3, %v1649_v19, %v1652_v49  ;;  %vm4218_vm0 = vcmp.lt.s32.totalorder %v3868_v3, 2  ;;  %vm4219_vm4 = vweird.f32 %v3354_v31  ;;  %vm4221_vm5 = vweird.f32 %v4220_v58 }
 0x1b6   :  { %v1961_v29 = vsel %vm4218_vm0, %v1957_v56, %v1960_v44  ;;  %v1191_v59 = vsel %vm4219_vm4, nan, %v1190_v15  ;;  %v1654_v18 = vsel %vm4221_vm5, nan, %v1653_v52  ;;  %vm4222_vm2 = vweird.f32 %v2979_v54 }
 0x1b7   :  { %v1962_v60 = vsel %vm4222_vm2, nan, %v1961_v29  ;;  %v2583_v17 = vsel %vm3892_vm8, %v3849_v16, %v2116_v1  ;;  %v1305_v42 = vor.u32 %v1304_v26, %v1303_v48  ;;  %v1308_v61 = vshll.u32 %v1307_v30, 23  ;;  %vm4226_vm8 = vmmov %vm4219_vm4 }
 0x1b8   :  { %v2419_v20 = vsel %vm2417_vm12, %v1171_v13, %v1185_v4  ;;  %v2422_v3 = vsel %vm2420_vm7, %v1188_v46, %v1179_v12  ;;  %2591 = vst [vmem:[#allocation2 + $0x20] sm:$0xff] %v2583_v17  ;;  %vm4223_vm6 = vcmp.lt.s32.totalorder %v2415_v36, 2  ;;  %v2579_v0 = vsel %vm3921_vm13, %v4224_v47, %v1500_v62  ;;  %v4227_v46 = vld [vmem:[#allocation16_spill] sm:$0xff] }
 0x1b9   :  { %v2423_v7 = vsel %vm4223_vm6, %v2419_v20, %v2422_v3  ;;  %v2580_v54 = vsel %vm3927_vm9, %v4225_v10, %v1654_v18  ;;  %v2581_v16 = vsel %vm3933_vm10, %v3839_v55, %v1808_v34  ;;  %v1309_v40 = vor.u32 4788187, %v1308_v61  ;;  %2587 = vst [vmem:[#allocation2] sm:$0xff] %v2579_v0 }
 0x1ba   :  { %v2424_v13 = vsel %vm4226_vm8, nan, %v2423_v7  ;;  %v2582_v36 = vsel %vm3947_vm15, %v3843_v39, %v1962_v60  ;;  %v2584_v50 = vsel %vm3960_vm11, %v3853_v9, %v2270_v21  ;;  %2588 = vst [vmem:[#allocation2 + $0x8] sm:$0xff] %v2580_v54  ;;  %v1312_v12 = vcvt.s32.f32 %v1305_v42 }
 0x1bb   :  { %v1310_v63 = vand.u32 2147483647, %v1309_v40  ;;  %v2585_v14 = vsel %vm3967_vm14, %v1191_v59, %v2424_v13  ;;  %2589 = vst [vmem:[#allocation2 + $0x10] sm:$0xff] %v2581_v16  ;;  %vm1194_vm13 = vcmp.lt.s32.totalorder %v4227_v46, 0  ;;  %v4228_v39 = vand.u32 2147483647, %v4227_v46 }
 0x1bc   :  { %2590 = vst [vmem:[#allocation2 + $0x18] sm:$0xff] %v2582_v36  ;;  %v1316_v9 = vsub.s32 4, %v3859_v6  ;;  %v81_v34 = vadd.s32 56, %v4175_v41  ;;  %vm1335_vm3 = vweird.f32 %v4227_v46 }
 0x1bd   :  { %v1313_v55 = vmul.f32 %v1312_v12, %v1310_v63  ;;  %2592 = vst [vmem:[#allocation2 + $0x28] sm:$0xff] %v2584_v50  ;;  %vm1193_vm7 = vcmp.le.f32.partialorder %v4228_v39, 0.7853982 }
 0x1be   :  { %2593 = vst [vmem:[#allocation2 + $0x30] sm:$0xff] %v2585_v14  ;;  %v1317_v22 = vsel %vm1194_vm13, %v1316_v9, %v3859_v6  ;;  %v98_v53 = vand.u32 1, %v81_v34 }
 0x1bf   :  { %v1314_v31 = vxor.u32 2147483648, %v1313_v55  ;;  %v1319_v32 = vsel %vm1193_vm7, 0, %v1317_v22 }
 0x1c0   :  { %v1336_v5 = vadd.s32 3, %v1319_v32  ;;  %v2569_v38 = vand.u32 3, %v1319_v32  ;;  %vm4054_vm15 = vcmp.eq.s32.totalorder %v98_v53, 0 }
 0x1c1   :  { %v1315_v45 = vsel %vm1194_vm13, %v1314_v31, %v1313_v55 }
 0x1c2   :  { %v1318_v25 = vsel %vm1193_vm7, %v4227_v46, %v1315_v45  ;;  %v1337_v15 = vand.u32 3, %v1336_v5  ;;  %vm2570_vm11 = vcmp.lt.s32.totalorder %v2569_v38, 2  ;;  %vm2571_vm14 = vcmp.eq.s32.totalorder %v2569_v38, 0 }
 0x1c3   :  { %v1320_v37 = vmul.f32 %v1318_v25, %v1318_v25  ;;  %vm2574_vm1 = vcmp.eq.s32.totalorder %v2569_v38, 2 }
 0x1c4   :  { %vm1338_vm9 = vcmp.lt.s32.totalorder %v1337_v15, 2  ;;  %vm1339_vm10 = vcmp.eq.s32.totalorder %v1337_v15, 0  ;;  %vm1342_vm12 = vcmp.eq.s32.totalorder %v1337_v15, 2 }
 0x1c5   :  { %v1321_v8 = vmul.f32 -0.001358992, %v1320_v37  ;;  %v1328_v43 = vmul.f32 -0.00019511016, %v1320_v37 }
 0x1c7   :  { %v1322_v4 = vadd.f32 0.041655596, %v1321_v8  ;;  %v1329_v1 = vadd.f32 0.008332121, %v1328_v43 }
 0x1c9   :  { %v1323_v33 = vmul.f32 %v1322_v4, %v1320_v37  ;;  %v1330_v62 = vmul.f32 %v1329_v1, %v1320_v37 }
 0x1cb   :  { %v1324_v11 = vadd.f32 -0.4999988, %v1323_v33  ;;  %v1331_v35 = vadd.f32 -0.16666654, %v1330_v62 }
 0x1cd   :  { %v1325_v28 = vmul.f32 %v1324_v11, %v1320_v37  ;;  %v1332_v23 = vmul.f32 %v1331_v35, %v1320_v37 }
 0x1cf   :  { %v1326_v27 = vadd.f32 1.0, %v1325_v28  ;;  %v1333_v49 = vadd.f32 1.0, %v1332_v23 }
 0x1d1   :  { %v1334_v6 = vmul.f32 %v1333_v49, %v1318_v25  ;;  %v1343_v51 = vxor.u32 2147483648, %v1326_v27 }
 0x1d3   :  { %v1340_v44 = vxor.u32 2147483648, %v1334_v6  ;;  %v1344_v48 = vsel %vm1342_vm12, %v1343_v51, %v1334_v6  ;;  %v2576_v19 = vsel %vm2574_vm1, %v1343_v51, %v1334_v6 }
 0x1d5   :  { %v1341_v41 = vsel %vm1339_vm10, %v1326_v27, %v1340_v44  ;;  %v2573_v2 = vsel %vm2571_vm14, %v1326_v27, %v1340_v44 }
 0x1d6   :  { %v1345_v24 = vsel %vm1338_vm9, %v1341_v41, %v1344_v48  ;;  %v2577_v56 = vsel %vm2570_vm11, %v2573_v2, %v2576_v19 }
 0x1d7   :  { %v1346_v21 = vsel %vm1335_vm3, nan, %v1345_v24  ;;  %v2578_v26 = vsel %vm1335_vm3, nan, %v2577_v56 }
 0x1d8   :  { %v2586_v30 = vsel %vm4054_vm15, %v1346_v21, %v2578_v26 }
 0x1d9   :  { %2594 = vst [vmem:[#allocation2 + $0x38] sm:$0xff] %v2586_v30 }
 0x1da   :  { %2607 = dma.vmem_to_hbm [thread:$0]  %s2600_s28, 1024, %s2602_s3, [#allocation3], %s2710_s2, %s2710_s2, %s2711_s4  }
 0x1db   :  { %2700 = dma.done.wait [#allocation3], 1024  }
 0x1dc   :  { %2701 = vsyncadd [#allocation3], 4294966272 }
 0x1dd   :  { %2612 = vsyncpa [#allocation3], 1 }

</bundles_post_ra>
